<compile_context>
chip_gen: v6e
topology: v6e:2x2x1
jax: 0.10.0
libtpu: 0.0.40
codegen_flags: <defaults>
</compile_context>

<pallas_src>
import functools
import math

import jax
import jax.numpy as jnp
from jax import lax
from jax.experimental import pallas as pl
from jax.experimental.pallas import tpu as pltpu


def _linear_attention_kernel(x_ref, wqkv_ref, wout_ref, bout_ref, g_ref, o_ref,
                             *, heads: int, dim_head: int, scale: float,
                             inv_n: float, eps: float):
    # x_ref:    (1, c, n)      one batch element, channels-first, n = h*w
    # wqkv_ref: (3*hidden, c)  to_qkv 1x1 conv weight (no bias)
    # wout_ref: (c, hidden)    to_out 1x1 conv weight
    # bout_ref: (c, 1)         to_out conv bias
    # g_ref:    (c, 1)         LayerNorm gain
    # o_ref:    (1, c, n)      output
    hidden = heads * dim_head

    x = x_ref[0]                                               # (c, n)
    qkv = jnp.dot(wqkv_ref[...], x,
                  preferred_element_type=jnp.float32)          # (3*hidden, n)

    head_outs = []
    for hd in range(heads):
        off = hd * dim_head
        q = qkv[off:off + dim_head, :]                               # (d, n)
        k = qkv[hidden + off:hidden + off + dim_head, :]             # (d, n)
        v = qkv[2 * hidden + off:2 * hidden + off + dim_head, :]     # (e, n)

        # q: softmax over the dim_head axis (torch dim=-2), numerically stable.
        q = q - jnp.max(q, axis=0, keepdims=True)
        q = jnp.exp(q)
        q = q / jnp.sum(q, axis=0, keepdims=True)
        q = q * scale

        # k: softmax over the spatial axis (torch dim=-1), numerically stable.
        k = k - jnp.max(k, axis=1, keepdims=True)
        k = jnp.exp(k)
        k = k / jnp.sum(k, axis=1, keepdims=True)

        v = v * inv_n

        # context[d, e] = sum_n k[d, n] * v[e, n]
        context = lax.dot_general(k, v, (((1,), (1,)), ((), ())),
                                  preferred_element_type=jnp.float32)  # (d, e)
        # out[e, n] = sum_d context[d, e] * q[d, n]
        out_h = lax.dot_general(context, q, (((0,), (0,)), ((), ())),
                                preferred_element_type=jnp.float32)    # (e, n)
        head_outs.append(out_h)

    out_all = jnp.concatenate(head_outs, axis=0)               # (hidden, n)

    # to_out 1x1 conv + bias.
    y = jnp.dot(wout_ref[...], out_all,
                preferred_element_type=jnp.float32) + bout_ref[...]    # (c, n)

    # LayerNorm over channels (axis 0): biased variance, learned gain g.
    mean = jnp.mean(y, axis=0, keepdims=True)
    var = jnp.mean((y - mean) * (y - mean), axis=0, keepdims=True)
    y = (y - mean) * lax.rsqrt(var + eps) * g_ref[...]

    o_ref[0] = y.astype(o_ref.dtype)


def linear_attention(x, w_qkv, w_out, b_out, g, *, heads=4, dim_head=32):
    """Pallas TPU implementation of Attention(dim, heads, dim_head, 'linear')."""
    b, c, h, w = x.shape
    n = h * w
    hidden = heads * dim_head
    assert w_qkv.shape == (3 * hidden, c)
    assert w_out.shape == (c, hidden)
    assert n % 128 == 0 and c % 8 == 0, "use lane/sublane friendly sizes"

    eps = 1e-5 if x.dtype == jnp.float32 else 1e-3
    scale = dim_head ** -0.5

    x_flat = x.astype(jnp.float32).reshape(b, c, n)
    b_out2 = b_out.astype(jnp.float32).reshape(c, 1)
    g2 = g.astype(jnp.float32).reshape(c, 1)

    kernel = functools.partial(
        _linear_attention_kernel,
        heads=heads, dim_head=dim_head, scale=scale, inv_n=1.0 / n, eps=eps)

    out = pl.pallas_call(
        kernel,
        out_shape=jax.ShapeDtypeStruct((b, c, n), jnp.float32),
        grid=(b,),
        in_specs=[
            pl.BlockSpec((1, c, n), lambda i: (i, 0, 0)),        # x (per batch)
            pl.BlockSpec((3 * hidden, c), lambda i: (0, 0)),     # W_qkv (resident)
            pl.BlockSpec((c, hidden), lambda i: (0, 0)),         # W_out (resident)
            pl.BlockSpec((c, 1), lambda i: (0, 0)),              # bias
            pl.BlockSpec((c, 1), lambda i: (0, 0)),              # LayerNorm gain
        ],
        out_specs=pl.BlockSpec((1, c, n), lambda i: (i, 0, 0)),
        compiler_params=pltpu.CompilerParams(
            dimension_semantics=("parallel",)),
    )(x_flat, w_qkv.astype(jnp.float32), w_out.astype(jnp.float32), b_out2, g2)

    return out.reshape(b, c, h, w)


def _reference(x, w_qkv, w_out, b_out, g, *, heads=4, dim_head=32):
    """Pure-JAX reference mirroring the PyTorch forward (attn_type='linear')."""
    b, c, h, w = x.shape
    n = h * w
    hidden = heads * dim_head
    scale = dim_head ** -0.5

    xf = x.reshape(b, c, n)
    qkv = jnp.einsum('oc,bcn->bon', w_qkv, xf)                 # (b, 3*hidden, n)
    q, k, v = jnp.split(qkv, 3, axis=1)
    q = q.reshape(b, heads, dim_head, n)
    k = k.reshape(b, heads, dim_head, n)
    v = v.reshape(b, heads, dim_head, n)

    q = jax.nn.softmax(q, axis=-2)
    k = jax.nn.softmax(k, axis=-1)
    v = v / (h * w)
    q = q * scale

    context = jnp.einsum('bhdn,bhen->bhde', k, v)
    out = jnp.einsum('bhde,bhdn->bhen', context, q)
    out = out.reshape(b, hidden, n)

    y = jnp.einsum('co,bon->bcn', w_out, out) + b_out[None, :, None]
    mean = jnp.mean(y, axis=1, keepdims=True)
    var = jnp.mean((y - mean) ** 2, axis=1, keepdims=True)
    y = (y - mean) * jax.lax.rsqrt(var + 1e-5) * g[None, :, None]
    return y.reshape(b, c, h, w)


if __name__ == "__main__":
    key = jax.random.PRNGKey(0)
    k0, k1, k2, k3 = jax.random.split(key, 4)

    batch, dim, hgt, wid = 2, 32, 16, 16
    heads, dim_head = 4, 32
    hidden = heads * dim_head

    x = jax.random.normal(k0, (batch, dim, hgt, wid), dtype=jnp.float32)
    w_qkv = jax.random.normal(k1, (3 * hidden, dim), dtype=jnp.float32) * 0.05
    w_out = jax.random.normal(k2, (dim, hidden), dtype=jnp.float32) * 0.05
    b_out = jax.random.normal(k3, (dim,), dtype=jnp.float32) * 0.1
    g = jnp.ones((dim,), dtype=jnp.float32)   # LayerNorm gain init

    out = linear_attention(x, w_qkv, w_out, b_out, g,
                           heads=heads, dim_head=dim_head)
    out = jax.block_until_ready(out)

    ref = _reference(x, w_qkv, w_out, b_out, g, heads=heads, dim_head=dim_head)
    assert out.shape == (batch, dim, hgt, wid)
    assert jnp.allclose(out, ref, atol=2e-4, rtol=2e-4), float(
        jnp.max(jnp.abs(out - ref)))

    print("KERNEL_OK")
</pallas_src>

<mosaic_0001>
module attributes {stable_mosaic.version = 11 : i64} {
  func.func @_linear_attention_kernel(%arg0: i32, %arg1: memref<1x32x256xf32, #tpu.memory_space<vmem>>, %arg2: memref<384x32xf32, #tpu.memory_space<vmem>>, %arg3: memref<32x128xf32, #tpu.memory_space<vmem>>, %arg4: memref<32x1xf32, #tpu.memory_space<vmem>>, %arg5: memref<32x1xf32, #tpu.memory_space<vmem>>, %arg6: memref<1x32x256xf32, #tpu.memory_space<vmem>>) attributes {dimension_semantics = [#tpu.dimension_semantics<parallel>], iteration_bounds = array<i64: 2>, scalar_prefetch = 0 : i64, scratch_operands = 0 : i64, tpu.core_type = #tpu.core_type<tc>, window_params = [{transform_indices = @transform_0, window_bounds = array<i64: 1, 32, 256>}, {pipeline_mode = #tpu.pipeline_mode<synchronous>, transform_indices = @transform_1, window_bounds = array<i64: 384, 32>}, {pipeline_mode = #tpu.pipeline_mode<synchronous>, transform_indices = @transform_2, window_bounds = array<i64: 32, 128>}, {pipeline_mode = #tpu.pipeline_mode<synchronous>, transform_indices = @transform_3, window_bounds = array<i64: 32, 1>}, {pipeline_mode = #tpu.pipeline_mode<synchronous>, transform_indices = @transform_4, window_bounds = array<i64: 32, 1>}, {transform_indices = @transform_5, window_bounds = array<i64: 1, 32, 256>}]} {
    %c0 = arith.constant 0 : index
    %c0_0 = arith.constant 0 : index
    %c0_1 = arith.constant 0 : index
    %0 = vector.load %arg1[%c0, %c0_0, %c0_1] : memref<1x32x256xf32, #tpu.memory_space<vmem>>, vector<1x32x256xf32>
    %1 = vector.shape_cast %0 : vector<1x32x256xf32> to vector<32x256xf32>
    %c0_2 = arith.constant 0 : index
    %c0_3 = arith.constant 0 : index
    %2 = vector.load %arg2[%c0_2, %c0_3] : memref<384x32xf32, #tpu.memory_space<vmem>>, vector<384x32xf32>
    %cst = arith.constant dense<0.000000e+00> : vector<384x256xf32>
    %3 = tpu.matmul %2, %1, %cst {dimension_numbers = #tpu.dot_dimension_numbers<[1], [0], [0], [1], [0, 0, 1, 1], [], []>} : vector<384x32xf32>, vector<32x256xf32>, vector<384x256xf32> -> vector<384x256xf32>
    %4 = vector.extract_strided_slice %3 {offsets = [0, 0], sizes = [32, 256], strides = [1, 1]} : vector<384x256xf32> to vector<32x256xf32>
    %5 = vector.extract_strided_slice %3 {offsets = [128, 0], sizes = [32, 256], strides = [1, 1]} : vector<384x256xf32> to vector<32x256xf32>
    %6 = vector.extract_strided_slice %3 {offsets = [256, 0], sizes = [32, 256], strides = [1, 1]} : vector<384x256xf32> to vector<32x256xf32>
    %cst_4 = arith.constant dense<0xFF800000> : vector<256xf32>
    %7 = vector.multi_reduction <maximumf>, %4, %cst_4 [0] : vector<32x256xf32> to vector<256xf32>
    %8 = vector.shape_cast %7 : vector<256xf32> to vector<1x256xf32>
    %9 = vector.broadcast %8 : vector<1x256xf32> to vector<32x256xf32>
    %10 = arith.subf %4, %9 : vector<32x256xf32>
    %11 = math.exp %10 : vector<32x256xf32>
    %cst_5 = arith.constant dense<0.000000e+00> : vector<256xf32>
    %12 = vector.multi_reduction <add>, %11, %cst_5 [0] : vector<32x256xf32> to vector<256xf32>
    %13 = vector.shape_cast %12 : vector<256xf32> to vector<1x256xf32>
    %14 = vector.broadcast %13 : vector<1x256xf32> to vector<32x256xf32>
    %15 = arith.divf %11, %14 : vector<32x256xf32>
    %cst_6 = arith.constant 0.176776692 : f32
    %16 = vector.broadcast %cst_6 : f32 to vector<32x256xf32>
    %17 = arith.mulf %15, %16 : vector<32x256xf32>
    %cst_7 = arith.constant dense<0xFF800000> : vector<32xf32>
    %18 = vector.multi_reduction <maximumf>, %5, %cst_7 [1] : vector<32x256xf32> to vector<32xf32>
    %19 = vector.shape_cast %18 : vector<32xf32> to vector<32x1xf32>
    %20 = vector.broadcast %19 : vector<32x1xf32> to vector<32x256xf32>
    %21 = arith.subf %5, %20 : vector<32x256xf32>
    %22 = math.exp %21 : vector<32x256xf32>
    %cst_8 = arith.constant dense<0.000000e+00> : vector<32xf32>
    %23 = vector.multi_reduction <add>, %22, %cst_8 [1] : vector<32x256xf32> to vector<32xf32>
    %24 = vector.shape_cast %23 : vector<32xf32> to vector<32x1xf32>
    %25 = vector.broadcast %24 : vector<32x1xf32> to vector<32x256xf32>
    %26 = arith.divf %22, %25 : vector<32x256xf32>
    %cst_9 = arith.constant 3.906250e-03 : f32
    %27 = vector.broadcast %cst_9 : f32 to vector<32x256xf32>
    %28 = arith.mulf %6, %27 : vector<32x256xf32>
    %cst_10 = arith.constant dense<0.000000e+00> : vector<32x32xf32>
    %29 = tpu.matmul %26, %28, %cst_10 {dimension_numbers = #tpu.dot_dimension_numbers<[1], [1], [0], [0], [0, 0, 1, 0], [], []>} : vector<32x256xf32>, vector<32x256xf32>, vector<32x32xf32> -> vector<32x32xf32>
    %cst_11 = arith.constant dense<0.000000e+00> : vector<32x256xf32>
    %30 = tpu.matmul %29, %17, %cst_11 {dimension_numbers = #tpu.dot_dimension_numbers<[0], [0], [1], [1], [0, 1, 1, 1], [], []>} : vector<32x32xf32>, vector<32x256xf32>, vector<32x256xf32> -> vector<32x256xf32>
    %31 = vector.extract_strided_slice %3 {offsets = [32, 0], sizes = [32, 256], strides = [1, 1]} : vector<384x256xf32> to vector<32x256xf32>
    %32 = vector.extract_strided_slice %3 {offsets = [160, 0], sizes = [32, 256], strides = [1, 1]} : vector<384x256xf32> to vector<32x256xf32>
    %33 = vector.extract_strided_slice %3 {offsets = [288, 0], sizes = [32, 256], strides = [1, 1]} : vector<384x256xf32> to vector<32x256xf32>
    %cst_12 = arith.constant dense<0xFF800000> : vector<256xf32>
    %34 = vector.multi_reduction <maximumf>, %31, %cst_12 [0] : vector<32x256xf32> to vector<256xf32>
    %35 = vector.shape_cast %34 : vector<256xf32> to vector<1x256xf32>
    %36 = vector.broadcast %35 : vector<1x256xf32> to vector<32x256xf32>
    %37 = arith.subf %31, %36 : vector<32x256xf32>
    %38 = math.exp %37 : vector<32x256xf32>
    %cst_13 = arith.constant dense<0.000000e+00> : vector<256xf32>
    %39 = vector.multi_reduction <add>, %38, %cst_13 [0] : vector<32x256xf32> to vector<256xf32>
    %40 = vector.shape_cast %39 : vector<256xf32> to vector<1x256xf32>
    %41 = vector.broadcast %40 : vector<1x256xf32> to vector<32x256xf32>
    %42 = arith.divf %38, %41 : vector<32x256xf32>
    %cst_14 = arith.constant 0.176776692 : f32
    %43 = vector.broadcast %cst_14 : f32 to vector<32x256xf32>
    %44 = arith.mulf %42, %43 : vector<32x256xf32>
    %cst_15 = arith.constant dense<0xFF800000> : vector<32xf32>
    %45 = vector.multi_reduction <maximumf>, %32, %cst_15 [1] : vector<32x256xf32> to vector<32xf32>
    %46 = vector.shape_cast %45 : vector<32xf32> to vector<32x1xf32>
    %47 = vector.broadcast %46 : vector<32x1xf32> to vector<32x256xf32>
    %48 = arith.subf %32, %47 : vector<32x256xf32>
    %49 = math.exp %48 : vector<32x256xf32>
    %cst_16 = arith.constant dense<0.000000e+00> : vector<32xf32>
    %50 = vector.multi_reduction <add>, %49, %cst_16 [1] : vector<32x256xf32> to vector<32xf32>
    %51 = vector.shape_cast %50 : vector<32xf32> to vector<32x1xf32>
    %52 = vector.broadcast %51 : vector<32x1xf32> to vector<32x256xf32>
    %53 = arith.divf %49, %52 : vector<32x256xf32>
    %cst_17 = arith.constant 3.906250e-03 : f32
    %54 = vector.broadcast %cst_17 : f32 to vector<32x256xf32>
    %55 = arith.mulf %33, %54 : vector<32x256xf32>
    %cst_18 = arith.constant dense<0.000000e+00> : vector<32x32xf32>
    %56 = tpu.matmul %53, %55, %cst_18 {dimension_numbers = #tpu.dot_dimension_numbers<[1], [1], [0], [0], [0, 0, 1, 0], [], []>} : vector<32x256xf32>, vector<32x256xf32>, vector<32x32xf32> -> vector<32x32xf32>
    %cst_19 = arith.constant dense<0.000000e+00> : vector<32x256xf32>
    %57 = tpu.matmul %56, %44, %cst_19 {dimension_numbers = #tpu.dot_dimension_numbers<[0], [0], [1], [1], [0, 1, 1, 1], [], []>} : vector<32x32xf32>, vector<32x256xf32>, vector<32x256xf32> -> vector<32x256xf32>
    %58 = vector.extract_strided_slice %3 {offsets = [64, 0], sizes = [32, 256], strides = [1, 1]} : vector<384x256xf32> to vector<32x256xf32>
    %59 = vector.extract_strided_slice %3 {offsets = [192, 0], sizes = [32, 256], strides = [1, 1]} : vector<384x256xf32> to vector<32x256xf32>
    %60 = vector.extract_strided_slice %3 {offsets = [320, 0], sizes = [32, 256], strides = [1, 1]} : vector<384x256xf32> to vector<32x256xf32>
    %cst_20 = arith.constant dense<0xFF800000> : vector<256xf32>
    %61 = vector.multi_reduction <maximumf>, %58, %cst_20 [0] : vector<32x256xf32> to vector<256xf32>
    %62 = vector.shape_cast %61 : vector<256xf32> to vector<1x256xf32>
    %63 = vector.broadcast %62 : vector<1x256xf32> to vector<32x256xf32>
    %64 = arith.subf %58, %63 : vector<32x256xf32>
    %65 = math.exp %64 : vector<32x256xf32>
    %cst_21 = arith.constant dense<0.000000e+00> : vector<256xf32>
    %66 = vector.multi_reduction <add>, %65, %cst_21 [0] : vector<32x256xf32> to vector<256xf32>
    %67 = vector.shape_cast %66 : vector<256xf32> to vector<1x256xf32>
    %68 = vector.broadcast %67 : vector<1x256xf32> to vector<32x256xf32>
    %69 = arith.divf %65, %68 : vector<32x256xf32>
    %cst_22 = arith.constant 0.176776692 : f32
    %70 = vector.broadcast %cst_22 : f32 to vector<32x256xf32>
    %71 = arith.mulf %69, %70 : vector<32x256xf32>
    %cst_23 = arith.constant dense<0xFF800000> : vector<32xf32>
    %72 = vector.multi_reduction <maximumf>, %59, %cst_23 [1] : vector<32x256xf32> to vector<32xf32>
    %73 = vector.shape_cast %72 : vector<32xf32> to vector<32x1xf32>
    %74 = vector.broadcast %73 : vector<32x1xf32> to vector<32x256xf32>
    %75 = arith.subf %59, %74 : vector<32x256xf32>
    %76 = math.exp %75 : vector<32x256xf32>
    %cst_24 = arith.constant dense<0.000000e+00> : vector<32xf32>
    %77 = vector.multi_reduction <add>, %76, %cst_24 [1] : vector<32x256xf32> to vector<32xf32>
    %78 = vector.shape_cast %77 : vector<32xf32> to vector<32x1xf32>
    %79 = vector.broadcast %78 : vector<32x1xf32> to vector<32x256xf32>
    %80 = arith.divf %76, %79 : vector<32x256xf32>
    %cst_25 = arith.constant 3.906250e-03 : f32
    %81 = vector.broadcast %cst_25 : f32 to vector<32x256xf32>
    %82 = arith.mulf %60, %81 : vector<32x256xf32>
    %cst_26 = arith.constant dense<0.000000e+00> : vector<32x32xf32>
    %83 = tpu.matmul %80, %82, %cst_26 {dimension_numbers = #tpu.dot_dimension_numbers<[1], [1], [0], [0], [0, 0, 1, 0], [], []>} : vector<32x256xf32>, vector<32x256xf32>, vector<32x32xf32> -> vector<32x32xf32>
    %cst_27 = arith.constant dense<0.000000e+00> : vector<32x256xf32>
    %84 = tpu.matmul %83, %71, %cst_27 {dimension_numbers = #tpu.dot_dimension_numbers<[0], [0], [1], [1], [0, 1, 1, 1], [], []>} : vector<32x32xf32>, vector<32x256xf32>, vector<32x256xf32> -> vector<32x256xf32>
    %85 = vector.extract_strided_slice %3 {offsets = [96, 0], sizes = [32, 256], strides = [1, 1]} : vector<384x256xf32> to vector<32x256xf32>
    %86 = vector.extract_strided_slice %3 {offsets = [224, 0], sizes = [32, 256], strides = [1, 1]} : vector<384x256xf32> to vector<32x256xf32>
    %87 = vector.extract_strided_slice %3 {offsets = [352, 0], sizes = [32, 256], strides = [1, 1]} : vector<384x256xf32> to vector<32x256xf32>
    %cst_28 = arith.constant dense<0xFF800000> : vector<256xf32>
    %88 = vector.multi_reduction <maximumf>, %85, %cst_28 [0] : vector<32x256xf32> to vector<256xf32>
    %89 = vector.shape_cast %88 : vector<256xf32> to vector<1x256xf32>
    %90 = vector.broadcast %89 : vector<1x256xf32> to vector<32x256xf32>
    %91 = arith.subf %85, %90 : vector<32x256xf32>
    %92 = math.exp %91 : vector<32x256xf32>
    %cst_29 = arith.constant dense<0.000000e+00> : vector<256xf32>
    %93 = vector.multi_reduction <add>, %92, %cst_29 [0] : vector<32x256xf32> to vector<256xf32>
    %94 = vector.shape_cast %93 : vector<256xf32> to vector<1x256xf32>
    %95 = vector.broadcast %94 : vector<1x256xf32> to vector<32x256xf32>
    %96 = arith.divf %92, %95 : vector<32x256xf32>
    %cst_30 = arith.constant 0.176776692 : f32
    %97 = vector.broadcast %cst_30 : f32 to vector<32x256xf32>
    %98 = arith.mulf %96, %97 : vector<32x256xf32>
    %cst_31 = arith.constant dense<0xFF800000> : vector<32xf32>
    %99 = vector.multi_reduction <maximumf>, %86, %cst_31 [1] : vector<32x256xf32> to vector<32xf32>
    %100 = vector.shape_cast %99 : vector<32xf32> to vector<32x1xf32>
    %101 = vector.broadcast %100 : vector<32x1xf32> to vector<32x256xf32>
    %102 = arith.subf %86, %101 : vector<32x256xf32>
    %103 = math.exp %102 : vector<32x256xf32>
    %cst_32 = arith.constant dense<0.000000e+00> : vector<32xf32>
    %104 = vector.multi_reduction <add>, %103, %cst_32 [1] : vector<32x256xf32> to vector<32xf32>
    %105 = vector.shape_cast %104 : vector<32xf32> to vector<32x1xf32>
    %106 = vector.broadcast %105 : vector<32x1xf32> to vector<32x256xf32>
    %107 = arith.divf %103, %106 : vector<32x256xf32>
    %cst_33 = arith.constant 3.906250e-03 : f32
    %108 = vector.broadcast %cst_33 : f32 to vector<32x256xf32>
    %109 = arith.mulf %87, %108 : vector<32x256xf32>
    %cst_34 = arith.constant dense<0.000000e+00> : vector<32x32xf32>
    %110 = tpu.matmul %107, %109, %cst_34 {dimension_numbers = #tpu.dot_dimension_numbers<[1], [1], [0], [0], [0, 0, 1, 0], [], []>} : vector<32x256xf32>, vector<32x256xf32>, vector<32x32xf32> -> vector<32x32xf32>
    %cst_35 = arith.constant dense<0.000000e+00> : vector<32x256xf32>
    %111 = tpu.matmul %110, %98, %cst_35 {dimension_numbers = #tpu.dot_dimension_numbers<[0], [0], [1], [1], [0, 1, 1, 1], [], []>} : vector<32x32xf32>, vector<32x256xf32>, vector<32x256xf32> -> vector<32x256xf32>
    %112 = tpu.concatenate %30, %57, %84, %111 in 0 : vector<32x256xf32>, vector<32x256xf32>, vector<32x256xf32>, vector<32x256xf32> -> vector<128x256xf32>
    %c0_36 = arith.constant 0 : index
    %c0_37 = arith.constant 0 : index
    %113 = vector.load %arg3[%c0_36, %c0_37] : memref<32x128xf32, #tpu.memory_space<vmem>>, vector<32x128xf32>
    %cst_38 = arith.constant dense<0.000000e+00> : vector<32x256xf32>
    %114 = tpu.matmul %113, %112, %cst_38 {dimension_numbers = #tpu.dot_dimension_numbers<[1], [0], [0], [1], [0, 0, 1, 1], [], []>} : vector<32x128xf32>, vector<128x256xf32>, vector<32x256xf32> -> vector<32x256xf32>
    %c0_39 = arith.constant 0 : index
    %c0_40 = arith.constant 0 : index
    %115 = vector.load %arg4[%c0_39, %c0_40] : memref<32x1xf32, #tpu.memory_space<vmem>>, vector<32x1xf32>
    %116 = vector.broadcast %115 : vector<32x1xf32> to vector<32x256xf32>
    %117 = arith.addf %114, %116 : vector<32x256xf32>
    %cst_41 = arith.constant dense<0.000000e+00> : vector<256xf32>
    %118 = vector.multi_reduction <add>, %117, %cst_41 [0] : vector<32x256xf32> to vector<256xf32>
    %119 = vector.shape_cast %118 : vector<256xf32> to vector<1x256xf32>
    %cst_42 = arith.constant 3.200000e+01 : f32
    %120 = vector.broadcast %cst_42 : f32 to vector<1x256xf32>
    %121 = arith.divf %119, %120 : vector<1x256xf32>
    %122 = vector.broadcast %121 : vector<1x256xf32> to vector<32x256xf32>
    %123 = arith.subf %117, %122 : vector<32x256xf32>
    %124 = vector.broadcast %121 : vector<1x256xf32> to vector<32x256xf32>
    %125 = arith.subf %117, %124 : vector<32x256xf32>
    %126 = arith.mulf %123, %125 : vector<32x256xf32>
    %cst_43 = arith.constant dense<0.000000e+00> : vector<256xf32>
    %127 = vector.multi_reduction <add>, %126, %cst_43 [0] : vector<32x256xf32> to vector<256xf32>
    %128 = vector.shape_cast %127 : vector<256xf32> to vector<1x256xf32>
    %cst_44 = arith.constant 3.200000e+01 : f32
    %129 = vector.broadcast %cst_44 : f32 to vector<1x256xf32>
    %130 = arith.divf %128, %129 : vector<1x256xf32>
    %131 = vector.broadcast %121 : vector<1x256xf32> to vector<32x256xf32>
    %132 = arith.subf %117, %131 : vector<32x256xf32>
    %cst_45 = arith.constant 9.99999974E-6 : f32
    %133 = vector.broadcast %cst_45 : f32 to vector<1x256xf32>
    %134 = arith.addf %130, %133 : vector<1x256xf32>
    %135 = math.rsqrt %134 : vector<1x256xf32>
    %136 = vector.broadcast %135 : vector<1x256xf32> to vector<32x256xf32>
    %137 = arith.mulf %132, %136 : vector<32x256xf32>
    %c0_46 = arith.constant 0 : index
    %c0_47 = arith.constant 0 : index
    %138 = vector.load %arg5[%c0_46, %c0_47] : memref<32x1xf32, #tpu.memory_space<vmem>>, vector<32x1xf32>
    %139 = vector.broadcast %138 : vector<32x1xf32> to vector<32x256xf32>
    %140 = arith.mulf %137, %139 : vector<32x256xf32>
    %c0_48 = arith.constant 0 : index
    %c0_49 = arith.constant 0 : index
    %c0_50 = arith.constant 0 : index
    %141 = vector.load %arg6[%c0_48, %c0_49, %c0_50] : memref<1x32x256xf32, #tpu.memory_space<vmem>>, vector<1x32x256xf32>
    %142 = vector.shape_cast %141 : vector<1x32x256xf32> to vector<32x256xf32>
    %143 = vector.shape_cast %140 : vector<32x256xf32> to vector<1x32x256xf32>
    tpu.vector_store %arg6[%c0_48, %c0_49, %c0_50], %143 {strides = array<i32>} : memref<1x32x256xf32, #tpu.memory_space<vmem>>, vector<1x32x256xf32>,
    return
  }
  func.func @transform_0(%arg0: i32) -> (i32, i32, i32) {
    %c0_i32 = arith.constant 0 : i32
    %c0_i32_0 = arith.constant 0 : i32
    %c0_i32_1 = arith.constant 0 : i32
    return %arg0, %c0_i32, %c0_i32_0 : i32, i32, i32
  }
  func.func @transform_1(%arg0: i32) -> (i32, i32) {
    %c0_i32 = arith.constant 0 : i32
    %c0_i32_0 = arith.constant 0 : i32
    %c0_i32_1 = arith.constant 0 : i32
    return %c0_i32, %c0_i32_0 : i32, i32
  }
  func.func @transform_2(%arg0: i32) -> (i32, i32) {
    %c0_i32 = arith.constant 0 : i32
    %c0_i32_0 = arith.constant 0 : i32
    %c0_i32_1 = arith.constant 0 : i32
    return %c0_i32, %c0_i32_0 : i32, i32
  }
  func.func @transform_3(%arg0: i32) -> (i32, i32) {
    %c0_i32 = arith.constant 0 : i32
    %c0_i32_0 = arith.constant 0 : i32
    %c0_i32_1 = arith.constant 0 : i32
    return %c0_i32, %c0_i32_0 : i32, i32
  }
  func.func @transform_4(%arg0: i32) -> (i32, i32) {
    %c0_i32 = arith.constant 0 : i32
    %c0_i32_0 = arith.constant 0 : i32
    %c0_i32_1 = arith.constant 0 : i32
    return %c0_i32, %c0_i32_0 : i32, i32
  }
  func.func @transform_5(%arg0: i32) -> (i32, i32, i32) {
    %c0_i32 = arith.constant 0 : i32
    %c0_i32_0 = arith.constant 0 : i32
    %c0_i32_1 = arith.constant 0 : i32
    return %arg0, %c0_i32, %c0_i32_0 : i32, i32, i32
  }
}

</mosaic_0001>

<bundles_post_ra>
// kernel: tpu_custom_call.1
= control target key start
LH: loop header
LB: loop body
LE: loop exit
PB: predicated region body
PF: predicated region fallthrough
CT: control target
= control target key end

     0   :  { %10 = vsyncpa [#allocation3], 0  ;;  %s4026_s0 = inlined_call_operand.vmem [shape: f32[2,32,256], index: 0, kind: input, shape index: {}]   ;;  %s4027_s1 = inlined_call_operand.vmem [shape: f32[384,32], index: 1, kind: input, shape index: {}]   ;;  %s4028_s2 = inlined_call_operand.vmem [shape: f32[32,128], index: 2, kind: input, shape index: {}]   ;;  %s4029_s3 = inlined_call_operand.vmem [shape: f32[32,1], index: 3, kind: input, shape index: {}]   ;;  %s4030_s4 = inlined_call_operand.vmem [shape: f32[32,1], index: 4, kind: input, shape index: {}]   ;;  %s4031_s5 = inlined_call_operand.hbm [shape: f32[2,32,256], index: 5, kind: output, shape index: {}]  }
   0x1   :  { %12 = vsyncpa [#allocation3 + $0x1], 0  ;;  %s2943_s18 = smov 0   ;;  %s2945_s19 = smov 0  }
   0x2   :  { %s2947_s20 = smov 0   ;;  %s2949_s21 = smov 0  }
   0x3 LB: > { %s2964_s22 = sadd.s32 4294967295, %s2906_s21   ;;  %s2535_s23 = sadd.s32 4294967294, %s2906_s21   ;;  %s2906_s21 = sphi %s2949_s21, %s4081_s21   ;;  %s2902_s20 = sphi %s2947_s20, %s4080_s20   ;;  %s2898_s19 = sphi %s2945_s19, %s4079_s19   ;;  %s2894_s18 = sphi %s2943_s18, %s4078_s18  }
   0x4   : > { %s2968_s24 = sadd.s32 1, %s2906_s21   ;;  %s135_s25 = sadd.s32 1, %s2902_s20 }
   0x5   : > { %s132_s26 = ssub.s32 %s2906_s21, %s2968_s24  ;;  %p145_p0 = scmp.ne.s32.totalorder %s2902_s20, %s2898_s19 }
   0x6   : > { %p133_p1 = scmp.eq.s32.totalorder %s132_s26, 0  ;;  %p146_p2 = scmp.eq.s32.totalorder %s2964_s22, 1 }
   0x7   : > { %p151_p3 = scmp.ne.s32.totalorder %s2898_s19, %s2894_s18  ;;  %p152_p4 = scmp.eq.s32.totalorder %s2535_s23, 1 }
   0x8   : > { %s2979_s27 = scalar_select %p133_p1, %s2902_s20, %s135_s25  }
   0x9   : > { %p2981_p5 = por %p146_p2, %p145_p0  ;;  %p2985_p6 = por %p152_p4, %p151_p3 }
   0xa   : > { %p2538_p7 = scmp.ge.s32.totalorder %s2906_s21, 1  ;;  %p190_p8 = scmp.lt.s32.totalorder %s2906_s21, 3 }
   0xc   : > { %p191_p9 = pnand %p2538_p7, %p190_p8 }
   0xe   : > { %194 = sbr.rel (%p191_p9) target bundleno = 2459 (0x99b), region = 40 }
  0x13   : > { %p218_p10 = scmp.lt.s32.totalorder %s2964_s22, 1  ;;  %v4032_v0 = vmov 0.0   ;;  %v231_v9 = vld [vmem:[%s4027_s1] sm:$0xff]  ;;  %vm279_vm0 = vcmask 261120   ;;  %v232_v10 = vld [vmem:[%s4027_s1 + $0x8] sm:$0xff]  ;;  %v233_v11 = vld [vmem:[%s4027_s1 + $0x10] sm:$0xff] }
  0x14   : > { %488 = vmatprep.mubr.f32.mxu0 %v4032_v0  ;;  %752 = vmatprep.mubr.f32.mxu1 %v4032_v0  ;;  %v234_v12 = vld [vmem:[%s4027_s1 + $0x18] sm:$0xff]  ;;  %v235_v13 = vld [vmem:[%s4027_s1 + $0x20] sm:$0xff]  ;;  %v236_v14 = vld [vmem:[%s4027_s1 + $0x28] sm:$0xff]  ;;  %s215_s23 = sand.u32 1, %s2898_s19   ;;  %s2612_s26 = sshll.u32 %s2964_s22, 10 }
  0x15   : > { %s219_s30 = scalar_select %p218_p10, %s2964_s22, 1  ;;  %v237_v15 = vld [vmem:[%s4027_s1 + $0x30] sm:$0xff]  ;;  %v238_v16 = vld [vmem:[%s4027_s1 + $0x38] sm:$0xff]  ;;  %v239_v17 = vld [vmem:[%s4027_s1 + $0x40] sm:$0xff] }
  0x16   : > { %v240_v18 = vld [vmem:[%s4027_s1 + $0x48] sm:$0xff]  ;;  %v241_v19 = vld [vmem:[%s4027_s1 + $0x50] sm:$0xff]  ;;  %v242_v20 = vld [vmem:[%s4027_s1 + $0x58] sm:$0xff]  ;;  %s2539_s25 = sshll.u32 %s215_s23, 6  ;;  %s3980_s22 = scalar_lea.hbm %s4031_s5, %s2612_s26 }
  0x17   : > { %s2611_s6 = sshll.u32 %s219_s30, 6  ;;  %v243_v21 = vld [vmem:[%s4027_s1 + $0x60] sm:$0xff]  ;;  %v244_v22 = vld [vmem:[%s4027_s1 + $0x68] sm:$0xff]  ;;  %v245_v23 = vld [vmem:[%s4027_s1 + $0x70] sm:$0xff]  ;;  %s217_s30 = scalar_lea.vmem [#allocation2], %s2539_s25 }
  0x18   : > { %s222_s9 = scalar_lea.vmem %s4026_s0, %s2611_s6  ;;  %v246_v24 = vld [vmem:[%s4027_s1 + $0x78] sm:$0xff]  ;;  %v247_v25 = vld [vmem:[%s4027_s1 + $0x80] sm:$0xff]  ;;  %v248_v26 = vld [vmem:[%s4027_s1 + $0x88] sm:$0xff]  ;;  %s2473_s6 = sshll.u32 %s217_s30, 4  ;;  %s3982_s6 = int_to_ptr.vmem [resolvable:$true] %s2473_s6 }
  0x19   : > { %v230_v1 = vld [vmem:[%s222_s9 + $0x38] sm:$0xff]  ;;  %v229_v2 = vld [vmem:[%s222_s9 + $0x30] sm:$0xff]  ;;  %v228_v3 = vld [vmem:[%s222_s9 + $0x28] sm:$0xff]  ;;  %s2846_s10 = scalar_lea.vmem %s3982_s6, 1024  ;;  %s2910_s11 = smov [#allocation2]  }
  0x1a   : > { %448 = vmatprep.subr.mxu0 %v230_v1  ;;  %v227_v4 = vld [vmem:[%s222_s9 + $0x20] sm:$0xff]  ;;  %2613 = vmatprep.subr.mxu1 %v230_v1  ;;  %v226_v5 = vld [vmem:[%s222_s9 + $0x18] sm:$0xff]  ;;  %v225_v6 = vld [vmem:[%s222_s9 + $0x10] sm:$0xff]  ;;  %p2847_p11 = scmp.ne.s32.totalorder %s3982_s6, %s2846_s10  ;;  %s2850_s12 = sshll.u32 %s2910_s11, 4  ;;  %s2851_s12 = int_to_ptr.vmem [resolvable:$false] %s2850_s12 }
  0x1b   : > { %449 = vmatpush1.msra.mxu0 %v229_v2  ;;  %2617 = vmatpush1.msra.mxu1 %v229_v2  ;;  %v224_v7 = vld [vmem:[%s222_s9 + $0x8] sm:$0xff]  ;;  %v223_v8 = vld [vmem:[%s222_s9] sm:$0xff]  ;;  %v249_v27 = vld [vmem:[%s4027_s1 + $0x90] sm:$0xff]  ;;  %s3986_s9 = scalar_lea.sflag [#allocation3], %s215_s23  ;;  %s2852_s13 = scalar_lea.vmem %s2851_s12, 2048 }
  0x1c   : > { %450 = vmatprep.subr.mxu0 %v228_v3  ;;  %2614 = vmatprep.subr.mxu1 %v228_v3  ;;  %v250_v28 = vld [vmem:[%s4027_s1 + $0x98] sm:$0xff]  ;;  %v251_v29 = vld [vmem:[%s4027_s1 + $0xa0] sm:$0xff]  ;;  %v252_v30 = vld [vmem:[%s4027_s1 + $0xa8] sm:$0xff]  ;;  %p2848_p12 = pnand %p2847_p11, %p2981_p5  ;;  %p2853_p0 = scmp.lt.s32.totalorder %s3982_s6, %s2851_s12 }
  0x1d   : > { %451 = vmatpush1.msra.mxu0 %v227_v4  ;;  %2618 = vmatpush1.msra.mxu1 %v227_v4  ;;  %v253_v31 = vld [vmem:[%s4027_s1 + $0xb0] sm:$0xff]  ;;  %v254_v32 = vld [vmem:[%s4027_s1 + $0xb8] sm:$0xff]  ;;  %v255_v33 = vld [vmem:[%s4027_s1 + $0xc0] sm:$0xff]  ;;  %p2854_p1 = scmp.lt.s32.totalorder %s2852_s13, %s2846_s10 }
  0x1e   : > { %452 = vmatprep.subr.mxu0 %v226_v5  ;;  %2615 = vmatprep.subr.mxu1 %v226_v5  ;;  %v256_v34 = vld [vmem:[%s4027_s1 + $0xc8] sm:$0xff]  ;;  %v257_v35 = vld [vmem:[%s4027_s1 + $0xd0] sm:$0xff]  ;;  %v258_v36 = vld [vmem:[%s4027_s1 + $0xd8] sm:$0xff]  ;;  %p2849_p13 = pneg %p2848_p12 }
  0x1f   : > { %453 = vmatpush1.msra.mxu0 %v225_v6  ;;  %2619 = vmatpush1.msra.mxu1 %v225_v6  ;;  %v259_v37 = vld [vmem:[%s4027_s1 + $0xe0] sm:$0xff]  ;;  %v260_v38 = vld [vmem:[%s4027_s1 + $0xe8] sm:$0xff]  ;;  %v261_v39 = vld [vmem:[%s4027_s1 + $0xf0] sm:$0xff]  ;;  %p2855_p2 = por %p2854_p1, %p2853_p0 }
  0x20   : > { %454 = vmatprep.subr.mxu0 %v224_v7  ;;  %2616 = vmatprep.subr.mxu1 %v224_v7  ;;  %v262_v40 = vld [vmem:[%s4027_s1 + $0xf8] sm:$0xff]  ;;  %v263_v41 = vld [vmem:[%s4027_s1 + $0x100] sm:$0xff]  ;;  %v264_v42 = vld [vmem:[%s4027_s1 + $0x108] sm:$0xff] }
  0x21   : > { %455 = vmatpush1.msra.mxu0 %v223_v8  ;;  %2620 = vmatpush1.msra.mxu1 %v223_v8  ;;  %v265_v43 = vld [vmem:[%s4027_s1 + $0x110] sm:$0xff]  ;;  %v266_v44 = vld [vmem:[%s4027_s1 + $0x118] sm:$0xff]  ;;  %v275_v61 = vld [vmem:[%s4027_s1 + $0x160] sm:$0xff]  ;;  %p2856_p3 = pnand %p2855_p2, %p2849_p13 }
  0x22   : > { %2542 = vmatmul.mubr.msk.f32.vlgmr.msra.gmra.mxu0 %vm279_vm0, %v231_v9  ;;  %2586 = vmatmul.mubr.msk.f32.vlgmr.msra.gmra.mxu1 %vm279_vm0, %v275_v61 }
  0x23   : > { %494 = vmatprep.mubr.f32.mxu0 %v4032_v0  ;;  %758 = vmatprep.mubr.f32.mxu1 %v4032_v0 }
  0x26   : > { %2543 = vmatmul.mubr.msk.f32.gmra.mxu0 %vm279_vm0, %v232_v10 }
  0x27   : > { %500 = vmatprep.mubr.f32.mxu0 %v4032_v0 }
  0x2a   : > { %2544 = vmatmul.mubr.msk.f32.gmra.mxu0 %vm279_vm0, %v233_v11 }
  0x2b   : > { %506 = vmatprep.mubr.f32.mxu0 %v4032_v0 }
  0x2e   : > { %2545 = vmatmul.mubr.msk.f32.gmra.mxu0 %vm279_vm0, %v234_v12 }
  0x2f   : > { %512 = vmatprep.mubr.f32.mxu0 %v4032_v0 }
  0x32   : > { %2546 = vmatmul.mubr.msk.f32.gmra.mxu0 %vm279_vm0, %v235_v13 }
  0x33   : > { %518 = vmatprep.mubr.f32.mxu0 %v4032_v0 }
  0x36   : > { %2547 = vmatmul.mubr.msk.f32.gmra.mxu0 %vm279_vm0, %v236_v14 }
  0x37   : > { %524 = vmatprep.mubr.f32.mxu0 %v4032_v0 }
  0x3a   : > { %2548 = vmatmul.mubr.msk.f32.gmra.mxu0 %vm279_vm0, %v237_v15 }
  0x3b   : > { %530 = vmatprep.mubr.f32.mxu0 %v4032_v0 }
  0x3e   : > { %2549 = vmatmul.mubr.msk.f32.gmra.mxu0 %vm279_vm0, %v238_v16 }
  0x3f   : > { %536 = vmatprep.mubr.f32.mxu0 %v4032_v0 }
  0x42   : > { %2550 = vmatmul.mubr.msk.f32.gmra.mxu0 %vm279_vm0, %v239_v17 }
  0x43   : > { %542 = vmatprep.mubr.f32.mxu0 %v4032_v0 }
  0x46   : > { %2551 = vmatmul.mubr.msk.f32.gmra.mxu0 %vm279_vm0, %v240_v18 }
  0x47   : > { %548 = vmatprep.mubr.f32.mxu0 %v4032_v0 }
  0x4a   : > { %2552 = vmatmul.mubr.msk.f32.gmra.mxu0 %vm279_vm0, %v241_v19 }
  0x4b   : > { %554 = vmatprep.mubr.f32.mxu0 %v4032_v0 }
  0x4e   : > { %2553 = vmatmul.mubr.msk.f32.gmra.mxu0 %vm279_vm0, %v242_v20 }
  0x4f   : > { %560 = vmatprep.mubr.f32.mxu0 %v4032_v0 }
  0x52   : > { %2554 = vmatmul.mubr.msk.f32.gmra.mxu0 %vm279_vm0, %v243_v21 }
  0x53   : > { %566 = vmatprep.mubr.f32.mxu0 %v4032_v0 }
  0x56   : > { %2555 = vmatmul.mubr.msk.f32.gmra.mxu0 %vm279_vm0, %v244_v22 }
  0x57   : > { %572 = vmatprep.mubr.f32.mxu0 %v4032_v0 }
  0x5a   : > { %2556 = vmatmul.mubr.msk.f32.gmra.mxu0 %vm279_vm0, %v245_v23 }
  0x5b   : > { %578 = vmatprep.mubr.f32.mxu0 %v4032_v0 }
  0x5e   : > { %2557 = vmatmul.mubr.msk.f32.gmra.mxu0 %vm279_vm0, %v246_v24 }
  0x5f   : > { %584 = vmatprep.mubr.f32.mxu0 %v4032_v0 }
  0x62   : > { %2558 = vmatmul.mubr.msk.f32.gmra.mxu0 %vm279_vm0, %v247_v25 }
  0x63   : > { %590 = vmatprep.mubr.f32.mxu0 %v4032_v0 }
  0x66   : > { %2559 = vmatmul.mubr.msk.f32.gmra.mxu0 %vm279_vm0, %v248_v26 }
  0x67   : > { %596 = vmatprep.mubr.f32.mxu0 %v4032_v0 }
  0x6a   : > { %2560 = vmatmul.mubr.msk.f32.gmra.mxu0 %vm279_vm0, %v249_v27 }
  0x6b   : > { %602 = vmatprep.mubr.f32.mxu0 %v4032_v0 }
  0x6e   : > { %2561 = vmatmul.mubr.msk.f32.gmra.mxu0 %vm279_vm0, %v250_v28 }
  0x6f   : > { %608 = vmatprep.mubr.f32.mxu0 %v4032_v0 }
  0x72   : > { %2562 = vmatmul.mubr.msk.f32.gmra.mxu0 %vm279_vm0, %v251_v29 }
  0x73   : > { %614 = vmatprep.mubr.f32.mxu0 %v4032_v0 }
  0x76   : > { %2563 = vmatmul.mubr.msk.f32.gmra.mxu0 %vm279_vm0, %v252_v30 }
  0x77   : > { %620 = vmatprep.mubr.f32.mxu0 %v4032_v0 }
  0x7a   : > { %2564 = vmatmul.mubr.msk.f32.gmra.mxu0 %vm279_vm0, %v253_v31 }
  0x7b   : > { %626 = vmatprep.mubr.f32.mxu0 %v4032_v0 }
  0x7e   : > { %2565 = vmatmul.mubr.msk.f32.gmra.mxu0 %vm279_vm0, %v254_v32 }
  0x7f   : > { %632 = vmatprep.mubr.f32.mxu0 %v4032_v0 }
  0x82   : > { %2566 = vmatmul.mubr.msk.f32.gmra.mxu0 %vm279_vm0, %v255_v33 }
  0x83   : > { %638 = vmatprep.mubr.f32.mxu0 %v4032_v0 }
  0x86   : > { %2567 = vmatmul.mubr.msk.f32.gmra.mxu0 %vm279_vm0, %v256_v34 }
  0x87   : > { %644 = vmatprep.mubr.f32.mxu0 %v4032_v0 }
  0x8a   : > { %2568 = vmatmul.mubr.msk.f32.gmra.mxu0 %vm279_vm0, %v257_v35 }
  0x8b   : > { %650 = vmatprep.mubr.f32.mxu0 %v4032_v0 }
  0x8e   : > { %2569 = vmatmul.mubr.msk.f32.gmra.mxu0 %vm279_vm0, %v258_v36 }
  0x8f   : > { %656 = vmatprep.mubr.f32.mxu0 %v4032_v0 }
  0x92   : > { %2570 = vmatmul.mubr.msk.f32.gmra.mxu0 %vm279_vm0, %v259_v37 }
  0x93   : > { %662 = vmatprep.mubr.f32.mxu0 %v4032_v0 }
  0x96   : > { %2571 = vmatmul.mubr.msk.f32.gmra.mxu0 %vm279_vm0, %v260_v38 }
  0x97   : > { %668 = vmatprep.mubr.f32.mxu0 %v4032_v0 }
  0x9a   : > { %2572 = vmatmul.mubr.msk.f32.gmra.mxu0 %vm279_vm0, %v261_v39 }
  0x9b   : > { %674 = vmatprep.mubr.f32.mxu0 %v4032_v0 }
  0x9e   : > { %2573 = vmatmul.mubr.msk.f32.gmra.mxu0 %vm279_vm0, %v262_v40 }
  0x9f   : > { %680 = vmatprep.mubr.f32.mxu0 %v4032_v0 }
  0xa2   : > { %2574 = vmatmul.mubr.msk.f32.gmra.mxu0 %vm279_vm0, %v263_v41 }
  0xa3   : > { %686 = vmatprep.mubr.f32.mxu0 %v4032_v0 }
  0xa6   : > { %2575 = vmatmul.mubr.msk.f32.gmra.mxu0 %vm279_vm0, %v264_v42 }
  0xa7   : > { %692 = vmatprep.mubr.f32.mxu0 %v4032_v0 }
  0xaa   : > { %2576 = vmatmul.mubr.msk.f32.gmra.mxu0 %vm279_vm0, %v265_v43 }
  0xab   : > { %698 = vmatprep.mubr.f32.mxu0 %v4032_v0 }
  0xae   : > { %2577 = vmatmul.mubr.msk.f32.gmra.mxu0 %vm279_vm0, %v266_v44 }
  0xaf   : > { %704 = vmatprep.mubr.f32.mxu0 %v4032_v0 }
  0xe2   : > { %v490_v45 = vpop.f32.mrf.mxu0 }
  0xe4   : > { %v492_v46 = vpop.f32.mrf.mxu0 }
  0xe6   : > { %v496_v47 = vpop.f32.mrf.mxu0 }
  0xe8   : > { %v498_v48 = vpop.f32.mrf.mxu0 }
  0xea   : > { %v502_v49 = vpop.f32.mrf.mxu0 }
  0xeb   : > { %v777_v50 = vmax.f32 %v490_v45, %v502_v49 }
  0xec   : > { %v504_v51 = vpop.f32.mrf.mxu0 }
  0xed   : > { %v786_v52 = vmax.f32 %v492_v46, %v504_v51 }
  0xee   : > { %v508_v53 = vpop.f32.mrf.mxu0 }
  0xef   : > { %v778_v54 = vmax.f32 %v496_v47, %v508_v53 }
  0xf0   : > { %v510_v55 = vpop.f32.mrf.mxu0 }
  0xf1   : > { %v779_v56 = vmax.f32 %v777_v50, %v778_v54  ;;  %v787_v57 = vmax.f32 %v498_v48, %v510_v55 }
  0xf2   : > { %v3178_v58 = vpop.f32.mrf.mxu0 }
  0xf3   : > { %v780_v59 = vrot.slane %v779_v56, 4  ;;  %v788_v60 = vmax.f32 %v786_v52, %v787_v57 }
  0xf4   : > { %v3183_v62 = vpop.f32.mrf.mxu0 }
  0xf5   : > { %v781_v63 = vmax.f32 %v779_v56, %v780_v59  ;;  %v789_v1 = vrot.slane %v788_v60, 4 }
  0xf6   : > { %v3187_v2 = vpop.f32.mrf.mxu0 }
  0xf7   : > { %v782_v3 = vrot.slane %v781_v63, 2  ;;  %v790_v4 = vmax.f32 %v788_v60, %v789_v1 }
  0xf8   : > { %v3189_v5 = vpop.f32.mrf.mxu0 }
  0xf9   : > { %v783_v6 = vmax.f32 %v781_v63, %v782_v3  ;;  %v791_v7 = vrot.slane %v790_v4, 2 }
  0xfa   : > { %v3191_v8 = vpop.f32.mrf.mxu0 }
  0xfb   : > { %v784_v9 = vrot.slane %v783_v6, 1  ;;  %v792_v10 = vmax.f32 %v790_v4, %v791_v7  ;;  %v1141_v11 = vmax.f32 %v3178_v58, %v3191_v8 }
  0xfc   : > { %v3195_v12 = vpop.f32.mrf.mxu0 }
  0xfd   : > { %v785_v13 = vmax.f32 %v783_v6, %v784_v9  ;;  %v793_v14 = vrot.slane %v792_v10, 1  ;;  %v1150_v15 = vmax.f32 %v3183_v62, %v3195_v12 }
  0xfe   : > { %v3199_v16 = vpop.f32.mrf.mxu0 }
  0xff   : > { %v795_v17 = vsub.f32 %v490_v45, %v785_v13  ;;  %v797_v18 = vsub.f32 %v496_v47, %v785_v13  ;;  %v799_v19 = vsub.f32 %v502_v49, %v785_v13  ;;  %v801_v20 = vsub.f32 %v508_v53, %v785_v13 }
 0x100   : > { %v794_v21 = vmax.f32 %v792_v10, %v793_v14  ;;  %v1142_v22 = vmax.f32 %v3187_v2, %v3199_v16  ;;  %v3203_v23 = vpop.f32.mrf.mxu0 }
 0x101   : > { %v803_v24 = vmul.f32 1.442695, %v795_v17  ;;  %v807_v25 = vmul.f32 1.442695, %v797_v18  ;;  %v811_v26 = vmul.f32 1.442695, %v799_v19  ;;  %v1151_v27 = vmax.f32 %v3189_v5, %v3203_v23 }
 0x102   : > { %v815_v28 = vmul.f32 1.442695, %v801_v20  ;;  %v796_v29 = vsub.f32 %v492_v46, %v794_v21  ;;  %v798_v30 = vsub.f32 %v498_v48, %v794_v21  ;;  %v800_v31 = vsub.f32 %v504_v51, %v794_v21  ;;  %v3207_v32 = vpop.f32.mrf.mxu0 }
 0x103   : > { %2666 = vpow2.f32 %v803_v24  ;;  %v802_v33 = vsub.f32 %v510_v55, %v794_v21  ;;  %v1143_v34 = vmax.f32 %v1141_v11, %v1142_v22  ;;  %v1152_v35 = vmax.f32 %v1150_v15, %v1151_v27 }
 0x104   : > { %2668 = vpow2.f32 %v807_v25  ;;  %v805_v36 = vmul.f32 1.442695, %v796_v29  ;;  %v809_v37 = vmul.f32 1.442695, %v798_v30  ;;  %v3209_v38 = vpop.f32.mrf.mxu0  ;;  %v813_v41 = vmul.f32 1.442695, %v800_v31 }
 0x105   : > { %2670 = vpow2.f32 %v811_v26  ;;  %v1144_v39 = vrot.slane %v1143_v34, 4  ;;  %v1153_v40 = vrot.slane %v1152_v35, 4  ;;  %v817_v45 = vmul.f32 1.442695, %v802_v33 }
 0x106   : > { %2672 = vpow2.f32 %v815_v28  ;;  %v3211_v42 = vpop.f32.mrf.mxu0 }
 0x107   : > { %2674 = vpow2.f32 %v805_v36  ;;  %v1145_v43 = vmax.f32 %v1143_v34, %v1144_v39  ;;  %v1154_v44 = vmax.f32 %v1152_v35, %v1153_v40 }
 0x108   : > { %2676 = vpow2.f32 %v809_v37  ;;  %v3213_v46 = vpop.f32.mrf.mxu0 }
 0x109   : > { %v1146_v47 = vrot.slane %v1145_v43, 2  ;;  %v1155_v48 = vrot.slane %v1154_v44, 2  ;;  %2678 = vpow2.f32 %v813_v41 }
 0x10a   : > { %v3215_v49 = vpop.f32.mrf.mxu0  ;;  %2680 = vpow2.f32 %v817_v45 }
 0x10b   : > { %v1147_v50 = vmax.f32 %v1145_v43, %v1146_v47  ;;  %v1156_v51 = vmax.f32 %v1154_v44, %v1155_v48  ;;  %v1505_v52 = vmax.f32 %v3207_v32, %v3215_v49 }
 0x10c   : > { %v3219_v53 = vpop.f32.mrf.mxu0 }
 0x10d   : > { %v1148_v54 = vrot.slane %v1147_v50, 1  ;;  %v1157_v55 = vrot.slane %v1156_v51, 1  ;;  %v1514_v56 = vmax.f32 %v3209_v38, %v3219_v53 }
 0x10e   : > { %v3223_v57 = vpop.f32.mrf.mxu0 }
 0x10f   : > { %v1149_v59 = vmax.f32 %v1147_v50, %v1148_v54  ;;  %v1158_v60 = vmax.f32 %v1156_v51, %v1157_v55  ;;  %v1506_v61 = vmax.f32 %v3211_v42, %v3223_v57 }
 0x110   : > { %v3227_v63 = vpop.eup %2666  ;;  %v3229_v1 = vpop.f32.mrf.mxu0 }
 0x111   : > { %v3231_v3 = vpop.eup %2668  ;;  %v1159_v4 = vsub.f32 %v3178_v58, %v1149_v59  ;;  %v1161_v6 = vsub.f32 %v3187_v2, %v1149_v59  ;;  %v1163_v7 = vsub.f32 %v3191_v8, %v1149_v59  ;;  %v1165_v9 = vsub.f32 %v3199_v16, %v1149_v59 }
 0x112   : > { %v3237_v10 = vpop.eup %2670  ;;  %v819_v11 = vadd.f32 %v3231_v3, %v3227_v63  ;;  %v1160_v13 = vsub.f32 %v3183_v62, %v1158_v60  ;;  %v1162_v14 = vsub.f32 %v3189_v5, %v1158_v60  ;;  %v1164_v15 = vsub.f32 %v3195_v12, %v1158_v60  ;;  %v3244_v17 = vpop.f32.mrf.mxu0 }
 0x113   : > { %v3246_v58 = vpop.eup %2672  ;;  %v1167_v2 = vmul.f32 1.442695, %v1159_v4  ;;  %v1171_v18 = vmul.f32 1.442695, %v1161_v6  ;;  %v1175_v8 = vmul.f32 1.442695, %v1163_v7  ;;  %v1166_v16 = vsub.f32 %v3203_v23, %v1158_v60 }
 0x114   : > { %v3249_v19 = vpop.eup %2674  ;;  %v820_v20 = vadd.f32 %v3237_v10, %v819_v11  ;;  %v1179_v21 = vmul.f32 1.442695, %v1165_v9  ;;  %v3252_v22 = vpop.f32.mrf.mxu0  ;;  %v1169_v5 = vmul.f32 1.442695, %v1160_v13  ;;  %v1173_v12 = vmul.f32 1.442695, %v1162_v14 }
 0x115   : > { %v3254_v62 = vpop.eup %2676  ;;  %2682 = vpow2.f32 %v1167_v2  ;;  %v1507_v24 = vmax.f32 %v1505_v52, %v1506_v61  ;;  %v1515_v23 = vmax.f32 %v3213_v46, %v3229_v1  ;;  %v1177_v29 = vmul.f32 1.442695, %v1164_v15 }
 0x116   : > { %v821_v25 = vadd.f32 %v3246_v58, %v820_v20  ;;  %v828_v26 = vadd.f32 %v3254_v62, %v3249_v19  ;;  %2684 = vpow2.f32 %v1171_v18  ;;  %v3261_v27 = vpop.f32.mrf.mxu0  ;;  %v3263_v28 = vpop.eup %2678  ;;  %v1181_v37 = vmul.f32 1.442695, %v1166_v16 }
 0x117   : > { %2686 = vpow2.f32 %v1175_v8  ;;  %v1508_v30 = vrot.slane %v1507_v24, 4  ;;  %v1516_v34 = vmax.f32 %v1514_v56, %v1515_v23  ;;  %v3268_v36 = vpop.eup %2680 }
 0x118   : > { %v822_v31 = vrot.slane %v821_v25, 4  ;;  %v829_v33 = vadd.f32 %v3263_v28, %v828_v26  ;;  %2688 = vpow2.f32 %v1179_v21  ;;  %v3266_v35 = vpop.f32.mrf.mxu0 }
 0x119   : > { %2690 = vpow2.f32 %v1169_v5  ;;  %v1509_v39 = vmax.f32 %v1507_v24, %v1508_v30  ;;  %v1517_v43 = vrot.slane %v1516_v34, 4 }
 0x11a   : > { %v823_v40 = vadd.f32 %v822_v31, %v821_v25  ;;  %v830_v41 = vadd.f32 %v3268_v36, %v829_v33  ;;  %2692 = vpow2.f32 %v1173_v12  ;;  %v3271_v44 = vpop.f32.mrf.mxu0 }
 0x11b   : > { %v1510_v45 = vrot.slane %v1509_v39, 2  ;;  %v1869_v47 = vmax.f32 %v3244_v17, %v3271_v44  ;;  %2694 = vpow2.f32 %v1177_v29  ;;  %v1518_v51 = vmax.f32 %v1516_v34, %v1517_v43 }
 0x11c   : > { %v824_v48 = vrot.slane %v823_v40, 2  ;;  %v831_v50 = vrot.slane %v830_v41, 4  ;;  %v3275_v52 = vpop.f32.mrf.mxu0  ;;  %2696 = vpow2.f32 %v1181_v37 }
 0x11d   : > { %v1511_v54 = vmax.f32 %v1509_v39, %v1510_v45  ;;  %v1878_v55 = vmax.f32 %v3252_v22, %v3275_v52  ;;  %v1519_v60 = vrot.slane %v1518_v51, 2 }
 0x11e   : > { %v825_v56 = vadd.f32 %v824_v48, %v823_v40  ;;  %v832_v59 = vadd.f32 %v831_v50, %v830_v41  ;;  %v3279_v61 = vpop.f32.mrf.mxu0 }
 0x11f   : > { %v1512_v4 = vrot.slane %v1511_v54, 1  ;;  %v1870_v6 = vmax.f32 %v3261_v27, %v3279_v61  ;;  %v1520_v11 = vmax.f32 %v1518_v51, %v1519_v60 }
 0x120   : > { %v826_v7 = vrot.slane %v825_v56, 1  ;;  %v833_v9 = vrot.slane %v832_v59, 2  ;;  %v3283_v13 = vpop.f32.mrf.mxu0 }
 0x121   : > { %v1513_v14 = vmax.f32 %v1511_v54, %v1512_v4  ;;  %v1871_v15 = vmax.f32 %v1869_v47, %v1870_v6  ;;  %v1879_v2 = vmax.f32 %v3266_v35, %v3283_v13  ;;  %v1521_v20 = vrot.slane %v1520_v11, 1 }
 0x122   : > { %v3287_v18 = vpop.eup %2682  ;;  %v827_v8 = vadd.f32 %v826_v7, %v825_v56  ;;  %v834_v16 = vadd.f32 %v833_v9, %v832_v59  ;;  %v3289_v21 = vpop.f32.mrf.mxu0 }
 0x123   : > { %v3291_v5 = vpop.eup %2684  ;;  %v1523_v12 = vsub.f32 %v3207_v32, %v1513_v14  ;;  %v1525_v24 = vsub.f32 %v3211_v42, %v1513_v14  ;;  %v1527_v25 = vsub.f32 %v3215_v49, %v1513_v14  ;;  %v1529_v26 = vsub.f32 %v3223_v57, %v1513_v14 }
 0x124   : > { %v3297_v23 = vpop.eup %2686  ;;  %2698 = vrcp.f32 %v827_v8  ;;  %v835_v29 = vrot.slane %v834_v16, 1  ;;  %v1183_v30 = vadd.f32 %v3291_v5, %v3287_v18  ;;  %v1522_v31 = vmax.f32 %v1520_v11, %v1521_v20  ;;  %v3301_v33 = vpop.f32.mrf.mxu0 }
 0x125   : > { %v3303_v34 = vpop.eup %2688  ;;  %v1531_v37 = vmul.f32 1.442695, %v1523_v12  ;;  %v1535_v32 = vmul.f32 1.442695, %v1525_v24  ;;  %v1539_v39 = vmul.f32 1.442695, %v1527_v25  ;;  %v1880_v42 = vmax.f32 %v1878_v55, %v1879_v2 }
 0x126   : > { %v3305_v40 = vpop.eup %2690  ;;  %v836_v49 = vadd.f32 %v835_v29, %v834_v16  ;;  %v1184_v57 = vadd.f32 %v3297_v23, %v1183_v30  ;;  %v1543_v41 = vmul.f32 1.442695, %v1529_v26  ;;  %v1524_v43 = vsub.f32 %v3209_v38, %v1522_v31  ;;  %v3309_v45 = vpop.f32.mrf.mxu0 }
 0x127   : > { %v3311_v47 = vpop.eup %2692  ;;  %2700 = vpow2.f32 %v1531_v37  ;;  %v1526_v48 = vsub.f32 %v3213_v46, %v1522_v31  ;;  %v1528_v50 = vsub.f32 %v3219_v53, %v1522_v31  ;;  %v1530_v51 = vsub.f32 %v3229_v1, %v1522_v31 }
 0x128   : > { %2702 = vrcp.f32 %v836_v49  ;;  %v1185_v54 = vadd.f32 %v3303_v34, %v1184_v57  ;;  %v1192_v55 = vadd.f32 %v3311_v47, %v3305_v40  ;;  %v1533_v56 = vmul.f32 1.442695, %v1524_v43  ;;  %v3319_v59 = vpop.f32.mrf.mxu0  ;;  %v3321_v38 = vpop.eup %2694 }
 0x129   : > { %2704 = vpow2.f32 %v1535_v32  ;;  %v1537_v60 = vmul.f32 1.442695, %v1526_v48  ;;  %v1541_v4 = vmul.f32 1.442695, %v1528_v50  ;;  %v1872_v53 = vrot.slane %v1871_v15, 4  ;;  %v3326_v7 = vpop.eup %2696 }
 0x12a   : > { %v1186_v6 = vrot.slane %v1185_v54, 4  ;;  %v1193_v46 = vadd.f32 %v3321_v38, %v1192_v55  ;;  %2706 = vpow2.f32 %v1539_v39  ;;  %v3324_v1 = vpop.f32.mrf.mxu0  ;;  %v1545_v9 = vmul.f32 1.442695, %v1530_v51 }
 0x12b   : > { %2708 = vpow2.f32 %v1543_v41  ;;  %v1881_v11 = vrot.slane %v1880_v42, 4  ;;  %v855_v14 = vmax.f32 %v3289_v21, %v3301_v33  ;;  %v1873_v16 = vmax.f32 %v1871_v15, %v1872_v53 }
 0x12c   : > { %v1187_v2 = vadd.f32 %v1186_v6, %v1185_v54  ;;  %v1194_v8 = vadd.f32 %v3326_v7, %v1193_v46  ;;  %2710 = vpow2.f32 %v1533_v56  ;;  %v3331_v20 = vpop.f32.mrf.mxu0  ;;  %v858_v24 = vmax.f32 %v3309_v45, %v3319_v59 }
 0x12d   : > { %2712 = vpow2.f32 %v1537_v60  ;;  %v1882_v12 = vmax.f32 %v1880_v42, %v1881_v11  ;;  %856 = vmax.xlane.f32.xlu0 %v855_v14  ;;  %v861_v25 = vmax.f32 %v3324_v1, %v3331_v20  ;;  %v1874_v30 = vrot.slane %v1873_v16, 2 }
 0x12e   : > { %v1188_v26 = vrot.slane %v1187_v2, 2  ;;  %v1195_v29 = vrot.slane %v1194_v8, 4  ;;  %v3337_v31 = vpop.f32.mrf.mxu0  ;;  %2714 = vpow2.f32 %v1541_v4 }
 0x12f   : > { %v1883_v37 = vrot.slane %v1882_v12, 2  ;;  %862 = vmax.xlane.f32.xlu1 %v861_v25  ;;  %v1875_v39 = vmax.f32 %v1873_v16, %v1874_v30  ;;  %2716 = vpow2.f32 %v1545_v9 }
 0x130   : > { %v1189_v15 = vadd.f32 %v1188_v26, %v1187_v2  ;;  %v1196_v32 = vadd.f32 %v1195_v29, %v1194_v8  ;;  %v3339_v49 = vpop.f32.mrf.mxu0 }
 0x131   : > { %v2699_v42 = vpop.eup %2698  ;;  %v1884_v57 = vmax.f32 %v1882_v12, %v1883_v37  ;;  %859 = vmax.xlane.f32.xlu0 %v858_v24  ;;  %v864_v41 = vmax.f32 %v3337_v31, %v3339_v49  ;;  %v1876_v50 = vrot.slane %v1875_v39, 1 }
 0x132   : > { %v1190_v43 = vrot.slane %v1189_v15, 1  ;;  %v1197_v48 = vrot.slane %v1196_v32, 2  ;;  %v3343_v51 = vpop.f32.mrf.mxu0  ;;  %v3346_v54 = vmul.f32 %v2699_v42, %v3246_v58  ;;  %v3349_v56 = vmul.f32 %v2699_v42, %v3237_v10 }
 0x133   : > { %v1885_v55 = vrot.slane %v1884_v57, 1  ;;  %865 = vmax.xlane.f32.xlu1 %v864_v41  ;;  %v3352_v60 = vmul.f32 %v2699_v42, %v3231_v3  ;;  %v3355_v4 = vmul.f32 %v2699_v42, %v3227_v63  ;;  %v1877_v9 = vmax.f32 %v1875_v39, %v1876_v50 }
 0x134   : > { %v3357_v6 = vpop.eup %2700  ;;  %v1191_v46 = vadd.f32 %v1190_v43, %v1189_v15  ;;  %v1198_v53 = vadd.f32 %v1197_v48, %v1196_v32  ;;  %v3359_v11 = vpop.f32.mrf.mxu0 }
 0x135   : > { %v2703_v58 = vpop.eup %2702  ;;  %v1886_v14 = vmax.f32 %v1884_v57, %v1885_v55  ;;  %v1887_v8 = vsub.f32 %v3244_v17, %v1877_v9  ;;  %v1889_v3 = vsub.f32 %v3261_v27, %v1877_v9  ;;  %v1891_v24 = vsub.f32 %v3271_v44, %v1877_v9 }
 0x136   : > { %v3361_v2 = vpop.eup %2704  ;;  %2718 = vrcp.f32 %v1191_v46  ;;  %v1199_v10 = vrot.slane %v1198_v53, 1  ;;  %v3365_v16 = vpop.f32.mrf.mxu0  ;;  %v1893_v25 = vsub.f32 %v3279_v61, %v1877_v9  ;;  %v3396_v46 = vmul.f32 %v2703_v58, %v3268_v36 }
 0x137   : > { %v3367_v63 = vpop.eup %2706  ;;  %v1547_v12 = vadd.f32 %v3361_v2, %v3357_v6  ;;  %v1888_v26 = vsub.f32 %v3252_v22, %v1886_v14  ;;  %v1895_v37 = vmul.f32 1.442695, %v1887_v8  ;;  %v1899_v17 = vmul.f32 1.442695, %v1889_v3 }
 0x138   : > { %v3374_v29 = vpop.eup %2708  ;;  %v1200_v30 = vadd.f32 %v1199_v10, %v1198_v53  ;;  %v1890_v27 = vsub.f32 %v3266_v35, %v1886_v14  ;;  %v3377_v15 = vpop.f32.mrf.mxu0  ;;  %v1903_v42 = vmul.f32 1.442695, %v1891_v24  ;;  %v1892_v44 = vsub.f32 %v3275_v52, %v1886_v14 }
 0x139   : > { %v3379_v32 = vpop.eup %2710  ;;  %v1548_v39 = vadd.f32 %v3367_v63, %v1547_v12  ;;  %v1907_v22 = vmul.f32 1.442695, %v1893_v25  ;;  %v1894_v61 = vsub.f32 %v3283_v13, %v1886_v14  ;;  %v1897_v48 = vmul.f32 1.442695, %v1888_v26 }
 0x13a   : > { %v3383_v57 = vpop.eup %2712  ;;  %2720 = vrcp.f32 %v1200_v30  ;;  %v3386_v41 = vpop.f32.mrf.mxu0  ;;  %v1901_v55 = vmul.f32 1.442695, %v1890_v27  ;;  %v3399_v13 = vmul.f32 %v2703_v58, %v3263_v28  ;;  %v3403_v14 = vmul.f32 %v2703_v58, %v3254_v62 }
 0x13b   : > { %v1549_v43 = vadd.f32 %v3374_v29, %v1548_v39  ;;  %v1556_v35 = vadd.f32 %v3383_v57, %v3379_v32  ;;  %2722 = vpow2.f32 %v1895_v37  ;;  %v3391_v50 = vpop.eup %2714  ;;  %v1905_v8 = vmul.f32 1.442695, %v1892_v44 }
 0x13c   : > { %2724 = vpow2.f32 %v1899_v17  ;;  %v3393_v52 = vpop.f32.mrf.mxu0  ;;  %v3405_v10 = vpop.eup %2716  ;;  %v3410_v12 = vmul.f32 %v2703_v58, %v3249_v19  ;;  %v1909_v24 = vmul.f32 1.442695, %v1894_v61 }
 0x13d   : > { %v1550_v53 = vrot.slane %v1549_v43, 4  ;;  %v1557_v9 = vadd.f32 %v3391_v50, %v1556_v35  ;;  %2726 = vpow2.f32 %v1903_v42 }
 0x13e   : > { %2728 = vpow2.f32 %v1907_v22  ;;  %v3407_v3 = vpop.f32.mrf.mxu0 }
 0x13f   : > { %v1551_v36 = vadd.f32 %v1550_v53, %v1549_v43  ;;  %v1558_v28 = vadd.f32 %v3405_v10, %v1557_v9  ;;  %2730 = vpow2.f32 %v1897_v48 }
 0x140   : > { %2732 = vpow2.f32 %v1901_v55  ;;  %v3413_v25 = vpop.f32.mrf.mxu0 }
 0x141   : > { %v1552_v26 = vrot.slane %v1551_v36, 2  ;;  %v1559_v62 = vrot.slane %v1558_v28, 4  ;;  %2734 = vpow2.f32 %v1905_v8 }
 0x142   : > { %v3415_v30 = vpop.f32.mrf.mxu0  ;;  %2736 = vpow2.f32 %v1909_v24 }
 0x143   : > { %v2719_v37 = vpop.eup %2718  ;;  %v1553_v17 = vadd.f32 %v1552_v26, %v1551_v36  ;;  %v1560_v27 = vadd.f32 %v1559_v62, %v1558_v28 }
 0x144   : > { %v3417_v39 = vpop.f32.mrf.mxu0  ;;  %v3420_v19 = vmul.f32 %v2719_v37, %v3303_v34  ;;  %v3423_v58 = vmul.f32 %v2719_v37, %v3297_v23  ;;  %v3426_v42 = vmul.f32 %v2719_v37, %v3291_v5  ;;  %v3429_v44 = vmul.f32 %v2719_v37, %v3287_v18 }
 0x145   : > { %v1554_v22 = vrot.slane %v1553_v17, 1  ;;  %v1561_v61 = vrot.slane %v1560_v27, 2 }
 0x146   : > { %4037 = vst [vmem:[#allocation5_spill] sm:$0xff] %v3420_v19  ;;  %4038 = vst [vmem:[#allocation6_spill] sm:$0xff] %v3423_v58  ;;  %v3431_v43 = vpop.f32.mrf.mxu0 }
 0x147   : > { %4039 = vst [vmem:[#allocation7_spill] sm:$0xff] %v3426_v42  ;;  %4040 = vst [vmem:[#allocation8_spill] sm:$0xff] %v3429_v44  ;;  %v2721_v35 = vpop.eup %2720  ;;  %v1555_v48 = vadd.f32 %v1554_v22, %v1553_v17  ;;  %v1562_v55 = vadd.f32 %v1561_v61, %v1560_v27 }
 0x148   : > { %v3433_v53 = vpop.eup %2722  ;;  %v3435_v34 = vpop.f32.mrf.mxu0  ;;  %v3438_v23 = vmul.f32 %v2721_v35, %v3326_v7  ;;  %v3441_v5 = vmul.f32 %v2721_v35, %v3321_v38  ;;  %v3444_v18 = vmul.f32 %v2721_v35, %v3311_v47  ;;  %v3447_v9 = vmul.f32 %v2721_v35, %v3305_v40 }
 0x149   : > { %v2725_v8 = vpop.eup %2724  ;;  %2738 = vrcp.f32 %v1555_v48  ;;  %v1563_v36 = vrot.slane %v1562_v55, 1 }
 0x14a   : > { %4041 = vst [vmem:[#allocation9_spill] sm:$0xff] %v3438_v23  ;;  %4042 = vst [vmem:[#allocation10_spill] sm:$0xff] %v3441_v5  ;;  %v2727_v28 = vpop.eup %2726  ;;  %v1911_v24 = vadd.f32 %v2725_v8, %v3433_v53  ;;  %v3450_v26 = vpop.f32.mrf.mxu0 }
 0x14b   : > { %4043 = vst [vmem:[#allocation11_spill] sm:$0xff] %v3444_v18  ;;  %4044 = vst [vmem:[#allocation12_spill] sm:$0xff] %v3447_v9  ;;  %v2729_v62 = vpop.eup %2728  ;;  %v1564_v7 = vadd.f32 %v1563_v36, %v1562_v55 }
 0x14c   : > { %v2731_v37 = vpop.eup %2730  ;;  %v1912_v17 = vadd.f32 %v2727_v28, %v1911_v24  ;;  %v3452_v38 = vpop.f32.mrf.mxu0 }
 0x14d   : > { %v2733_v27 = vpop.eup %2732  ;;  %2740 = vrcp.f32 %v1564_v7 }
 0x14e   : > { %v1913_v47 = vadd.f32 %v2729_v62, %v1912_v17  ;;  %v1920_v22 = vadd.f32 %v2733_v27, %v2731_v37  ;;  %v3454_v40 = vpop.f32.mrf.mxu0  ;;  %v2735_v61 = vpop.eup %2734 }
 0x14f   : > { %v2737_v35 = vpop.eup %2736 }
 0x150   : > { %v1914_v48 = vrot.slane %v1913_v47, 4  ;;  %v1921_v0 = vadd.f32 %v2735_v61, %v1920_v22  ;;  %v3456_v44 = vpop.f32.mrf.mxu0 }
 0x152   : > { %v1915_v9 = vadd.f32 %v1914_v48, %v1913_v47  ;;  %v1922_v42 = vadd.f32 %v2737_v35, %v1921_v0  ;;  %v3458_v18 = vpop.f32.mrf.mxu0 }
 0x153   : > { %4045 = vst [vmem:[#allocation13_spill] sm:$0xff] %v3458_v18 }
 0x154   : > { %v1916_v55 = vrot.slane %v1915_v9, 2  ;;  %v1923_v36 = vrot.slane %v1922_v42, 4  ;;  %v3460_v24 = vpop.f32.mrf.mxu0 }
 0x156   : > { %v2739_v58 = vpop.eup %2738  ;;  %v1917_v7 = vadd.f32 %v1916_v55, %v1915_v9  ;;  %v1924_v17 = vadd.f32 %v1923_v36, %v1922_v42  ;;  %v3462_v5 = vpop.f32.mrf.mxu0 }
 0x157   : > { %v3465_v19 = vmul.f32 %v2739_v58, %v3374_v29  ;;  %v3468_v22 = vmul.f32 %v2739_v58, %v3367_v63  ;;  %v3471_v47 = vmul.f32 %v2739_v58, %v3361_v2  ;;  %v3474_v0 = vmul.f32 %v2739_v58, %v3357_v6 }
 0x158   : > { %v1918_v48 = vrot.slane %v1917_v7, 1  ;;  %v1925_v23 = vrot.slane %v1924_v17, 2  ;;  %v3476_v18 = vpop.f32.mrf.mxu0 }
 0x159   : > { %4046 = vst [vmem:[#allocation14_spill] sm:$0xff] %v3465_v19  ;;  %4047 = vst [vmem:[#allocation15_spill] sm:$0xff] %v3468_v22 }
 0x15a   : > { %4048 = vst [vmem:[#allocation16_spill] sm:$0xff] %v3471_v47  ;;  %4049 = vst [vmem:[#allocation17_spill] sm:$0xff] %v3474_v0  ;;  %v2741_v9 = vpop.eup %2740  ;;  %v1919_v42 = vadd.f32 %v1918_v48, %v1917_v7  ;;  %v1926_v55 = vadd.f32 %v1925_v23, %v1924_v17  ;;  %v3478_v36 = vpop.f32.mrf.mxu0 }
 0x15b   : > { %v3481_v29 = vmul.f32 %v2741_v9, %v3405_v10  ;;  %v3484_v63 = vmul.f32 %v2741_v9, %v3391_v50  ;;  %v3487_v2 = vmul.f32 %v2741_v9, %v3383_v57  ;;  %v3490_v6 = vmul.f32 %v2741_v9, %v3379_v32 }
 0x15c   : > { %2742 = vrcp.f32 %v1919_v42  ;;  %v1927_v58 = vrot.slane %v1926_v55, 1  ;;  %v3492_v0 = vpop.f32.mrf.mxu0 }
 0x15d   : > { %4050 = vst [vmem:[#allocation18_spill] sm:$0xff] %v3481_v29  ;;  %4051 = vst [vmem:[#allocation19_spill] sm:$0xff] %v3484_v63 }
 0x15e   : > { %4052 = vst [vmem:[#allocation20_spill] sm:$0xff] %v3487_v2  ;;  %4053 = vst [vmem:[#allocation21_spill] sm:$0xff] %v3490_v6  ;;  %v1928_v7 = vadd.f32 %v1927_v58, %v1926_v55  ;;  %v3494_v23 = vpop.f32.mrf.mxu0 }
 0x160   : > { %2744 = vrcp.f32 %v1928_v7  ;;  %v3496_v17 = vpop.f32.mrf.mxu0 }
 0x162   : > { %v682_v10 = vpop.f32.mrf.mxu0 }
 0x164   : > { %v684_v48 = vpop.f32.mrf.mxu0 }
 0x166   : > { %v688_v50 = vpop.f32.mrf.mxu0 }
 0x168   : > { %v690_v47 = vpop.f32.mrf.mxu0 }
 0x169   : > { %v2743_v22 = vpop.eup %2742 }
 0x16a   : > { %v694_v57 = vpop.f32.mrf.mxu0  ;;  %v3498_v2 = vmul.f32 %v2743_v22, %v2729_v62  ;;  %v3500_v32 = vmul.f32 %v2743_v22, %v2727_v28  ;;  %v3502_v9 = vmul.f32 %v2743_v22, %v2725_v8  ;;  %v3505_v42 = vmul.f32 %v2743_v22, %v3433_v53 }
 0x16b   : > { %v919_v8 = vmul.f32 0.00390625, %v694_v57  ;;  %v918_v53 = vmul.f32 0.00390625, %v690_v47  ;;  %v917_v22 = vmul.f32 0.00390625, %v688_v50 }
 0x16c   : > { %4054 = vst [vmem:[#allocation22_spill] sm:$0xff] %v3498_v2  ;;  %4055 = vst [vmem:[#allocation23_spill] sm:$0xff] %v3500_v32  ;;  %v696_v55 = vpop.f32.mrf.mxu0 }
 0x16d   : > { %4056 = vst [vmem:[#allocation24_spill] sm:$0xff] %v3505_v42  ;;  %v2745_v58 = vpop.eup %2744  ;;  %v920_v28 = vmul.f32 0.00390625, %v696_v55  ;;  %v916_v42 = vmul.f32 0.00390625, %v684_v48 }
 0x16e   : > { %v700_v7 = vpop.f32.mrf.mxu0  ;;  %v3507_v6 = vmul.f32 %v2745_v58, %v2737_v35  ;;  %v3509_v63 = vmul.f32 %v2745_v58, %v2735_v61  ;;  %v3511_v19 = vmul.f32 %v2745_v58, %v2733_v27  ;;  %v3513_v29 = vmul.f32 %v2745_v58, %v2731_v37 }
 0x16f   : > { %v921_v62 = vmul.f32 0.00390625, %v700_v7  ;;  %v915_v35 = vmul.f32 0.00390625, %v682_v10  ;;  %v854_v27 = vmul.f32 0.17677669, %v3396_v46 }
 0x170   : > { %v702_v2 = vpop.f32.mrf.mxu0 }
 0x171   : > { %v922_v32 = vmul.f32 0.00390625, %v702_v2 }
 0x173   : > { %947 = vmatprep.subr.mxu1 %v922_v32 }
 0x174   : > { %948 = vmatpush1.xpose.msra.mxu1 %v921_v62 }
 0x175   : > { %949 = vmatprep.subr.mxu1 %v920_v28 }
 0x178   : > { %950 = vmatpush1.xpose.msra.mxu1 %v919_v8 }
 0x179   : > { %951 = vmatprep.subr.mxu1 %v918_v53 }
 0x17c   : > { %952 = vmatpush1.xpose.msra.mxu1 %v917_v22 }
 0x17d   : > { %953 = vmatprep.subr.mxu1 %v916_v42 }
 0x180   : > { %954 = vmatpush1.xpose.msra.mxu1 %v915_v35 }
 0x181   : > { %1076 = vmatprep.subr.mxu1 %v854_v27 }
 0x1b6   : > { %v857_v37 = vpop.xlane.xlu0 %856 }
 0x1b7   : > { %v867_v61 = vsub.f32 %v3289_v21, %v857_v37  ;;  %v868_v2 = vsub.f32 %v3301_v33, %v857_v37 }
 0x1b8   : > { %v863_v57 = vpop.xlane.xlu1 %862 }
 0x1b9   : > { %v875_v32 = vmul.f32 1.442695, %v867_v61  ;;  %v877_v47 = vmul.f32 1.442695, %v868_v2  ;;  %v871_v50 = vsub.f32 %v3324_v1, %v863_v57  ;;  %v872_v48 = vsub.f32 %v3331_v20, %v863_v57 }
 0x1ba   : > { %v860_v55 = vpop.xlane.xlu0 %859  ;;  %v1219_v57 = vmax.f32 %v3343_v51, %v3359_v11 }
 0x1bb   : > { %2746 = vpow2.f32 %v875_v32  ;;  %v869_v10 = vsub.f32 %v3309_v45, %v860_v55  ;;  %v870_v46 = vsub.f32 %v3319_v59, %v860_v55  ;;  %v883_v42 = vmul.f32 1.442695, %v871_v50  ;;  %v276_v50 = vld [vmem:[%s4027_s1 + $0x168] sm:$0xff] }
 0x1bc   : > { %2748 = vpow2.f32 %v877_v47  ;;  %v885_v58 = vmul.f32 1.442695, %v872_v48  ;;  %v866_v7 = vpop.xlane.xlu1 %865  ;;  %v1222_v32 = vmax.f32 %v3365_v16, %v3377_v15  ;;  %v1225_v47 = vmax.f32 %v3386_v41, %v3393_v52  ;;  %2587 = vmatmul.mubr.msk.f32.gmra.mxu1 %vm279_vm0, %v276_v50 }
 0x1bd   : > { %v879_v21 = vmul.f32 1.442695, %v869_v10  ;;  %v881_v62 = vmul.f32 1.442695, %v870_v46  ;;  %2750 = vpow2.f32 %v883_v42  ;;  %v873_v33 = vsub.f32 %v3337_v31, %v866_v7  ;;  %v277_v10 = vld [vmem:[%s4027_s1 + $0x170] sm:$0xff]  ;;  %v278_v46 = vld [vmem:[%s4027_s1 + $0x178] sm:$0xff] }
 0x1be   : > { %2752 = vpow2.f32 %v885_v58  ;;  %v874_v1 = vsub.f32 %v3339_v49, %v866_v7  ;;  %v1228_v48 = vmax.f32 %v3407_v3, %v3413_v25  ;;  %v4057_v55 = vmov 0.0   ;;  %v267_v42 = vld [vmem:[%s4027_s1 + $0x120] sm:$0xff]  ;;  %v268_v58 = vld [vmem:[%s4027_s1 + $0x128] sm:$0xff]  ;;  %v269_v7 = vld [vmem:[%s4027_s1 + $0x130] sm:$0xff] }
 0x1bf   : > { %2754 = vpow2.f32 %v879_v21  ;;  %v887_v20 = vmul.f32 1.442695, %v873_v33  ;;  %764 = vmatprep.mubr.f32.mxu1 %v4057_v55  ;;  %2578 = vmatmul.mubr.msk.f32.gmra.mxu0 %vm279_vm0, %v267_v42  ;;  %v270_v21 = vld [vmem:[%s4027_s1 + $0x138] sm:$0xff] }
 0x1c0   : > { %2756 = vpow2.f32 %v881_v62  ;;  %v889_v28 = vmul.f32 1.442695, %v874_v1  ;;  %2588 = vmatmul.mubr.msk.f32.gmra.mxu1 %vm279_vm0, %v277_v10  ;;  %710 = vmatprep.mubr.f32.mxu0 %v4057_v55 }
 0x1c1   : > { %2758 = vpow2.f32 %v887_v20  ;;  %770 = vmatprep.mubr.f32.mxu1 %v4057_v55 }
 0x1c2   : > { %2760 = vpow2.f32 %v889_v28 }
 0x1c3   : > { %2579 = vmatmul.mubr.msk.f32.gmra.mxu0 %vm279_vm0, %v268_v58 }
 0x1c4   : > { %2589 = vmatmul.mubr.msk.f32.gmra.mxu1 %vm279_vm0, %v278_v46  ;;  %716 = vmatprep.mubr.f32.mxu0 %v4057_v55 }
 0x1c7   : > { %2580 = vmatmul.mubr.msk.f32.gmra.mxu0 %vm279_vm0, %v269_v7 }
 0x1c8   : > { %v3524_v45 = vpop.eup %2746  ;;  %722 = vmatprep.mubr.f32.mxu0 %v4057_v55 }
 0x1c9   : > { %v3526_v59 = vpop.eup %2748 }
 0x1ca   : > { %v3528_v8 = vpop.eup %2750  ;;  %v891_v53 = vadd.f32 %v3526_v59, %v3524_v45 }
 0x1cb   : > { %v3532_v22 = vpop.eup %2752  ;;  %2581 = vmatmul.mubr.msk.f32.gmra.mxu0 %vm279_vm0, %v270_v21 }
 0x1cc   : > { %v3534_v31 = vpop.eup %2754  ;;  %892 = vadd.xlane.f32.xlu0 %v891_v53  ;;  %v897_v49 = vadd.f32 %v3532_v22, %v3528_v8  ;;  %728 = vmatprep.mubr.f32.mxu0 %v4057_v55 }
 0x1cd   : > { %v3538_v35 = vpop.eup %2756 }
 0x1ce   : > { %v3540_v27 = vpop.eup %2758  ;;  %v894_v37 = vadd.f32 %v3538_v35, %v3534_v31 }
 0x1cf   : > { %v3544_v61 = vpop.eup %2760 }
 0x1d0   : > { %895 = vadd.xlane.f32.xlu1 %v894_v37  ;;  %898 = vadd.xlane.f32.xlu0 %v897_v49  ;;  %v900_v2 = vadd.f32 %v3544_v61, %v3540_v27 }
 0x1d4   : > { %901 = vadd.xlane.f32.xlu1 %v900_v2  ;;  %1220 = vmax.xlane.f32.xlu0 %v1219_v57 }
 0x1d8   : > { %1223 = vmax.xlane.f32.xlu1 %v1222_v32  ;;  %1226 = vmax.xlane.f32.xlu0 %v1225_v47 }
 0x1dc   : > { %1229 = vmax.xlane.f32.xlu1 %v1228_v48 }
 0x255   : > { %v893_v62 = vpop.xlane.xlu0 %892 }
 0x256   : > { %2762 = vrcp.f32 %v893_v62 }
 0x259   : > { %v896_v33 = vpop.xlane.xlu1 %895  ;;  %v899_v1 = vpop.xlane.xlu0 %898 }
 0x25a   : > { %2764 = vrcp.f32 %v896_v33 }
 0x25b   : > { %2766 = vrcp.f32 %v899_v1  ;;  %v851_v1 = vmul.f32 0.17677669, %v3349_v56  ;;  %v849_v56 = vmul.f32 0.17677669, %v3352_v60 }
 0x25d   : > { %v902_v20 = vpop.xlane.xlu1 %901  ;;  %v1221_v28 = vpop.xlane.xlu0 %1220 }
 0x25e   : > { %2768 = vrcp.f32 %v902_v20  ;;  %v1231_v53 = vsub.f32 %v3343_v51, %v1221_v28  ;;  %v1232_v49 = vsub.f32 %v3359_v11, %v1221_v28 }
 0x260   : > { %v1239_v37 = vmul.f32 1.442695, %v1231_v53  ;;  %v1241_v2 = vmul.f32 1.442695, %v1232_v49  ;;  %v848_v53 = vmul.f32 0.17677669, %v3410_v12 }
 0x261   : > { %v1224_v57 = vpop.xlane.xlu1 %1223  ;;  %v1227_v32 = vpop.xlane.xlu0 %1226 }
 0x262   : > { %2770 = vpow2.f32 %v1239_v37  ;;  %v1233_v47 = vsub.f32 %v3365_v16, %v1224_v57  ;;  %v1234_v50 = vsub.f32 %v3377_v15, %v1224_v57  ;;  %v1235_v48 = vsub.f32 %v3386_v41, %v1227_v32 }
 0x263   : > { %v2763_v10 = vpop.eup %2762  ;;  %2772 = vpow2.f32 %v1241_v2  ;;  %v1236_v46 = vsub.f32 %v3393_v52, %v1227_v32  ;;  %v853_v16 = vmul.f32 0.17677669, %v3346_v54  ;;  %v852_v52 = vmul.f32 0.17677669, %v3399_v13 }
 0x264   : > { %v1243_v42 = vmul.f32 1.442695, %v1233_v47  ;;  %v1245_v58 = vmul.f32 1.442695, %v1234_v50  ;;  %v1247_v51 = vmul.f32 1.442695, %v1235_v48  ;;  %v905_v11 = vmul.f32 %v2763_v10, %v3526_v59 }
 0x265   : > { %v1249_v7 = vmul.f32 1.442695, %v1236_v46  ;;  %v904_v21 = vmul.f32 %v2763_v10, %v3524_v45  ;;  %v1230_v62 = vpop.xlane.xlu1 %1229  ;;  %v850_v54 = vmul.f32 0.17677669, %v3403_v14  ;;  %v847_v14 = vmul.f32 0.17677669, %v3355_v4 }
 0x266   : > { %2774 = vpow2.f32 %v1243_v42  ;;  %987 = vmatprep.mubr.f32.mxu1 %v905_v11  ;;  %v1237_v15 = vsub.f32 %v3407_v3, %v1230_v62  ;;  %v1238_v41 = vsub.f32 %v3413_v25, %v1230_v62  ;;  %v1583_v50 = vmax.f32 %v3415_v30, %v3417_v39 }
 0x267   : > { %v2765_v33 = vpop.eup %2764  ;;  %2776 = vpow2.f32 %v1245_v58  ;;  %988 = vmatmul.mubr.f32.vlgmr.msra.gmra.mxu1 %v904_v21  ;;  %v1586_v48 = vmax.f32 %v3431_v43, %v3435_v34  ;;  %v1589_v10 = vmax.f32 %v3450_v26, %v3452_v38  ;;  %v1592_v46 = vmax.f32 %v3454_v40, %v3456_v44 }
 0x268   : > { %v2767_v59 = vpop.eup %2766  ;;  %2778 = vpow2.f32 %v1247_v51  ;;  %1077 = vmatpush1.msra.mxu1 %v853_v16  ;;  %v1251_v45 = vmul.f32 1.442695, %v1237_v15  ;;  %v1253_v20 = vmul.f32 1.442695, %v1238_v41  ;;  %v908_v28 = vmul.f32 %v2765_v33, %v3538_v35 }
 0x269   : > { %2780 = vpow2.f32 %v1249_v7  ;;  %1078 = vmatprep.subr.mxu1 %v852_v52  ;;  %v907_v3 = vmul.f32 %v2765_v33, %v3534_v31  ;;  %v911_v25 = vmul.f32 %v2767_v59, %v3532_v22  ;;  %v910_v35 = vmul.f32 %v2767_v59, %v3528_v8 }
 0x26a   : > { %2782 = vpow2.f32 %v1251_v45  ;;  %1079 = vmatpush1.msra.mxu1 %v851_v1  ;;  %992 = vmatprep.mubr.f32.mxu1 %v908_v28  ;;  %v3666_v45 = vpop.f32.mrf.mxu1 }
 0x26b   : > { %v2769_v13 = vpop.eup %2768  ;;  %2784 = vpow2.f32 %v1253_v20  ;;  %1080 = vmatprep.subr.mxu1 %v850_v54  ;;  %993 = vmatmul.mubr.f32.gmra.mxu1 %v907_v3 }
 0x26c   : > { %1081 = vmatpush1.msra.mxu1 %v849_v56  ;;  %997 = vmatprep.mubr.f32.mxu1 %v911_v25  ;;  %v914_v31 = vmul.f32 %v2769_v13, %v3544_v61  ;;  %v913_v60 = vmul.f32 %v2769_v13, %v3540_v27  ;;  %v3670_v56 = vpop.f32.mrf.mxu1 }
 0x26d   : > { %1082 = vmatprep.subr.mxu1 %v848_v53 }
 0x26e   : > { %1083 = vmatpush1.msra.mxu1 %v847_v14 }
 0x26f   : > { %v3612_v22 = vpop.eup %2770  ;;  %998 = vmatmul.mubr.f32.gmra.mxu1 %v910_v35 }
 0x270   : > { %v3615_v49 = vpop.eup %2772  ;;  %1002 = vmatprep.mubr.f32.mxu1 %v914_v31 }
 0x271   : > { %v1255_v12 = vadd.f32 %v3615_v49, %v3612_v22 }
 0x273   : > { %v3619_v8 = vpop.eup %2774  ;;  %1003 = vmatmul.mubr.f32.gmra.mxu1 %v913_v60  ;;  %1256 = vadd.xlane.f32.xlu0 %v1255_v12 }
 0x274   : > { %v3621_v4 = vpop.eup %2776  ;;  %1116 = vmatprep.mubr.f32.mxu1 %v4057_v55 }
 0x275   : > { %v3624_v61 = vpop.eup %2778  ;;  %v1258_v37 = vadd.f32 %v3621_v4, %v3619_v8 }
 0x276   : > { %v3628_v27 = vpop.eup %2780 }
 0x277   : > { %v3630_v2 = vpop.eup %2782  ;;  %v1261_v57 = vadd.f32 %v3628_v27, %v3624_v61  ;;  %1259 = vadd.xlane.f32.xlu1 %v1258_v37 }
 0x278   : > { %v3634_v32 = vpop.eup %2784 }
 0x279   : > { %1262 = vadd.xlane.f32.xlu0 %v1261_v57  ;;  %v1264_v47 = vadd.f32 %v3634_v32, %v3630_v2 }
 0x27b   : > { %1265 = vadd.xlane.f32.xlu1 %v1264_v47 }
 0x27c   : > { %v3674_v14 = vpop.f32.mrf.mxu1 }
 0x27e   : > { %v3678_v37 = vpop.f32.mrf.mxu1 }
 0x27f   : > { %1584 = vmax.xlane.f32.xlu1 %v1583_v50  ;;  %v3646_v42 = vpop.f32.mrf.mxu0 }
 0x281   : > { %v3648_v58 = vpop.f32.mrf.mxu0 }
 0x283   : > { %1587 = vmax.xlane.f32.xlu1 %v1586_v48  ;;  %v3650_v51 = vpop.f32.mrf.mxu0 }
 0x285   : > { %v3652_v11 = vpop.f32.mrf.mxu0 }
 0x287   : > { %1590 = vmax.xlane.f32.xlu1 %v1589_v10  ;;  %v3654_v7 = vpop.f32.mrf.mxu0 }
 0x289   : > { %v3656_v21 = vpop.f32.mrf.mxu0 }
 0x28b   : > { %1593 = vmax.xlane.f32.xlu1 %v1592_v46  ;;  %v3658_v62 = vpop.f32.mrf.mxu0 }
 0x28d   : > { %v726_v16 = vpop.f32.mrf.mxu0 }
 0x28e   : > { %v1286_v15 = vmul.f32 0.00390625, %v726_v16 }
 0x290   : > { %1311 = vmatprep.subr.mxu1 %v1286_v15 }
 0x300   : > { %v3660_v41 = vpop.xlane.xlu1 %1259 }
 0x304   : > { %v3662_v33 = vpop.xlane.xlu1 %1265 }
 0x308   : > { %v1585_v52 = vpop.xlane.xlu1 %1584 }
 0x309   : > { %v1595_v1 = vsub.f32 %v3415_v30, %v1585_v52  ;;  %v1596_v59 = vsub.f32 %v3417_v39, %v1585_v52 }
 0x30b   : > { %v1603_v20 = vmul.f32 1.442695, %v1595_v1  ;;  %v1605_v28 = vmul.f32 1.442695, %v1596_v59 }
 0x30c   : > { %v1588_v54 = vpop.xlane.xlu1 %1587 }
 0x30d   : > { %2786 = vpow2.f32 %v1603_v20  ;;  %v1597_v3 = vsub.f32 %v3431_v43, %v1588_v54  ;;  %v1598_v25 = vsub.f32 %v3435_v34, %v1588_v54 }
 0x30e   : > { %2788 = vpow2.f32 %v1605_v28 }
 0x30f   : > { %v1607_v13 = vmul.f32 1.442695, %v1597_v3  ;;  %v1609_v53 = vmul.f32 1.442695, %v1598_v25 }
 0x310   : > { %v1591_v35 = vpop.xlane.xlu1 %1590 }
 0x311   : > { %2790 = vpow2.f32 %v1607_v13  ;;  %v1599_v30 = vsub.f32 %v3450_v26, %v1591_v35  ;;  %v1600_v39 = vsub.f32 %v3452_v38, %v1591_v35  ;;  %v3680_v26 = vpop.f32.mrf.mxu1 }
 0x312   : > { %2792 = vpow2.f32 %v1609_v53 }
 0x313   : > { %v1611_v31 = vmul.f32 1.442695, %v1599_v30  ;;  %v1613_v60 = vmul.f32 1.442695, %v1600_v39  ;;  %v3688_v10 = vpop.f32.mrf.mxu1 }
 0x314   : > { %v1594_v12 = vpop.xlane.xlu1 %1593 }
 0x315   : > { %2794 = vpow2.f32 %v1611_v31  ;;  %v1601_v43 = vsub.f32 %v3454_v40, %v1594_v12  ;;  %v1602_v34 = vsub.f32 %v3456_v44, %v1594_v12  ;;  %v3696_v16 = vpop.f32.mrf.mxu1 }
 0x316   : > { %2796 = vpow2.f32 %v1613_v60  ;;  %v4058_v60 = vld [vmem:[#allocation13_spill] sm:$0xff] }
 0x317   : > { %v1615_v57 = vmul.f32 1.442695, %v1601_v43  ;;  %v1617_v47 = vmul.f32 1.442695, %v1602_v34  ;;  %v3704_v59 = vpop.f32.mrf.mxu1  ;;  %v1947_v12 = vmax.f32 %v4058_v60, %v3460_v24  ;;  %v1953_v43 = vmax.f32 %v3478_v36, %v3492_v0 }
 0x318   : > { %v1956_v34 = vmax.f32 %v3494_v23, %v3496_v17 }
 0x319   : > { %2798 = vpow2.f32 %v1615_v57  ;;  %v271_v57 = vld [vmem:[%s4027_s1 + $0x140] sm:$0xff] }
 0x31a   : > { %v3682_v38 = vpop.eup %2786  ;;  %2800 = vpow2.f32 %v1617_v47  ;;  %2582 = vmatmul.mubr.msk.f32.gmra.mxu0 %vm279_vm0, %v271_v57  ;;  %v272_v47 = vld [vmem:[%s4027_s1 + $0x148] sm:$0xff] }
 0x31b   : > { %v3684_v50 = vpop.eup %2788  ;;  %734 = vmatprep.mubr.f32.mxu0 %v4057_v55 }
 0x31c   : > { %v1619_v48 = vadd.f32 %v3684_v50, %v3682_v38 }
 0x31e   : > { %v3690_v40 = vpop.eup %2790  ;;  %1620 = vadd.xlane.f32.xlu1 %v1619_v48  ;;  %2583 = vmatmul.mubr.msk.f32.gmra.mxu0 %vm279_vm0, %v272_v47  ;;  %v273_v48 = vld [vmem:[%s4027_s1 + $0x150] sm:$0xff] }
 0x31f   : > { %v3692_v44 = vpop.eup %2792  ;;  %740 = vmatprep.mubr.f32.mxu0 %v4057_v55 }
 0x320   : > { %v1622_v46 = vadd.f32 %v3692_v44, %v3690_v40 }
 0x322   : > { %v3698_v15 = vpop.eup %2794  ;;  %1623 = vadd.xlane.f32.xlu1 %v1622_v46  ;;  %2584 = vmatmul.mubr.msk.f32.gmra.mxu0 %vm279_vm0, %v273_v48  ;;  %v274_v46 = vld [vmem:[%s4027_s1 + $0x158] sm:$0xff] }
 0x323   : > { %v3700_v52 = vpop.eup %2796  ;;  %746 = vmatprep.mubr.f32.mxu0 %v4057_v55 }
 0x324   : > { %v1625_v1 = vadd.f32 %v3700_v52, %v3698_v15 }
 0x326   : > { %v3706_v20 = vpop.eup %2798  ;;  %1626 = vadd.xlane.f32.xlu1 %v1625_v1  ;;  %2585 = vmatmul.mubr.msk.f32.gmra.mxu0 %vm279_vm0, %v274_v46  ;;  %v1257_v1 = vpop.xlane.xlu0 %1256 }
 0x327   : > { %v3708_v28 = vpop.eup %2800  ;;  %v989_v54 = vpop.f32.mrf.mxu1  ;;  %2802 = vrcp.f32 %v1257_v1  ;;  %v4063_v1 = vld [vmem:[#allocation11_spill] sm:$0xff] }
 0x328   : > { %1008 = vxpose.xlu0.b32.start [1/4] (short) (narrow) %v989_v54, 32  ;;  %v1628_v3 = vadd.f32 %v3708_v28, %v3706_v20  ;;  %2804 = vrcp.f32 %v3660_v41 }
 0x329   : > { %v991_v25 = vpop.f32.mrf.mxu1 }
 0x32a   : > { %1629 = vadd.xlane.f32.xlu1 %v1628_v3  ;;  %v1263_v54 = vpop.xlane.xlu0 %1262  ;;  %v1285_v3 = vmul.f32 0.00390625, %v3658_v62 }
 0x32b   : > { %v994_v13 = vpop.f32.mrf.mxu1  ;;  %2806 = vrcp.f32 %v1263_v54  ;;  %v1214_v54 = vmul.f32 0.17677669, %v4063_v1 }
 0x32c   : > { %1009 = vxpose.xlu0.b32.cont [2/4] (short) (narrow) %v994_v13, 32  ;;  %v1284_v13 = vmul.f32 0.00390625, %v3656_v21  ;;  %2808 = vrcp.f32 %v3662_v33  ;;  %v1281_v21 = vmul.f32 0.00390625, %v3650_v51  ;;  %v4059_v33 = vld [vmem:[#allocation9_spill] sm:$0xff] }
 0x32d   : > { %v996_v53 = vpop.f32.mrf.mxu1  ;;  %v1218_v51 = vmul.f32 0.17677669, %v4059_v33 }
 0x32e   : > { %v1283_v53 = vmul.f32 0.00390625, %v3654_v7 }
 0x32f   : > { %v999_v35 = vpop.f32.mrf.mxu1 }
 0x330   : > { %1010 = vxpose.xlu0.b32.cont [3/4] (short) (narrow) %v999_v35, 32 }
 0x331   : > { %v1001_v30 = vpop.f32.mrf.mxu1 }
 0x332   : > { %v1282_v30 = vmul.f32 0.00390625, %v3652_v11  ;;  %v1279_v11 = vmul.f32 0.00390625, %v3646_v42  ;;  %v4061_v42 = vld [vmem:[#allocation10_spill] sm:$0xff] }
 0x333   : > { %v1004_v39 = vpop.f32.mrf.mxu1  ;;  %v1216_v48 = vmul.f32 0.17677669, %v4061_v42 }
 0x334   : > { %1011 = vxpose.xlu0.b32.end [4/4] (short) (narrow) %v1004_v39, 32  ;;  %v2803_v41 = vpop.eup %2802  ;;  %v1280_v39 = vmul.f32 0.00390625, %v3648_v58 }
 0x335   : > { %v1006_v31 = vpop.f32.mrf.mxu1  ;;  %v1268_v58 = vmul.f32 %v2803_v41, %v3612_v22 }
 0x336   : > { %v1269_v31 = vmul.f32 %v2803_v41, %v3615_v49  ;;  %v4062_v49 = vld [vmem:[#allocation6_spill] sm:$0xff] }
 0x337   : > { %v1215_v46 = vmul.f32 0.17677669, %v4062_v49 }
 0x361   : > { %1948 = vmax.xlane.f32.xlu0 %v1947_v12  ;;  %v2805_v12 = vpop.eup %2804 }
 0x362   : > { %v1272_v57 = vmul.f32 %v2805_v12, %v3621_v4  ;;  %v2807_v47 = vpop.eup %2806  ;;  %v4065_v4 = vld [vmem:[#allocation12_spill] sm:$0xff] }
 0x365   : > { %1954 = vmax.xlane.f32.xlu0 %v1953_v43  ;;  %v4060_v43 = vld [vmem:[#allocation5_spill] sm:$0xff] }
 0x369   : > { %1957 = vmax.xlane.f32.xlu0 %v1956_v34  ;;  %v1217_v34 = vmul.f32 0.17677669, %v4060_v43 }
 0x3a4   : > { %v1024_v25 = vpop.trf.xlu0 }
 0x3a5   : > { %2590 = vmatmul.mubr.msk.f32.vlgmr.msra.gmra.mxu1 %vm279_vm0, %v1024_v25  ;;  %v4064_v25 = vld [vmem:[#allocation7_spill] sm:$0xff] }
 0x3a6   : > { %1312 = vmatpush1.xpose.msra.mxu1 %v1285_v3  ;;  %1122 = vmatprep.mubr.f32.mxu1 %v4057_v55  ;;  %v1271_v3 = vmul.f32 %v2805_v12, %v3619_v8  ;;  %v1213_v22 = vmul.f32 0.17677669, %v4064_v25 }
 0x3a7   : > { %1313 = vmatprep.subr.mxu1 %v1284_v13  ;;  %v1275_v13 = vmul.f32 %v2807_v47, %v3628_v27 }
 0x3a8   : > { %v1025_v35 = vpop.trf.xlu0 }
 0x3a9   : > { %2591 = vmatmul.mubr.msk.f32.gmra.mxu1 %vm279_vm0, %v1025_v35  ;;  %v1212_v35 = vmul.f32 0.17677669, %v4065_v4 }
 0x3aa   : > { %1314 = vmatpush1.xpose.msra.mxu1 %v1283_v53  ;;  %1128 = vmatprep.mubr.f32.mxu1 %v4057_v55  ;;  %v2809_v53 = vpop.eup %2808 }
 0x3ab   : > { %1315 = vmatprep.subr.mxu1 %v1282_v30  ;;  %v4066_v30 = vld [vmem:[#allocation8_spill] sm:$0xff]  ;;  %v1278_v8 = vmul.f32 %v2809_v53, %v3634_v32  ;;  %v1277_v41 = vmul.f32 %v2809_v53, %v3630_v2 }
 0x3ac   : > { %v1026_v62 = vpop.trf.xlu0 }
 0x3ad   : > { %2592 = vmatmul.mubr.msk.f32.gmra.mxu1 %vm279_vm0, %v1026_v62  ;;  %v1274_v62 = vmul.f32 %v2807_v47, %v3624_v61 }
 0x3ae   : > { %1316 = vmatpush1.xpose.msra.mxu1 %v1281_v21  ;;  %1134 = vmatprep.mubr.f32.mxu1 %v4057_v55  ;;  %v1211_v21 = vmul.f32 0.17677669, %v4066_v30 }
 0x3af   : > { %1317 = vmatprep.subr.mxu1 %v1280_v39 }
 0x3b0   : > { %v1027_v7 = vpop.trf.xlu0 }
 0x3b1   : > { %2593 = vmatmul.mubr.msk.f32.gmra.mxu1 %vm279_vm0, %v1027_v7 }
 0x3b2   : > { %1318 = vmatpush1.xpose.msra.mxu1 %v1279_v11  ;;  %1351 = vmatprep.mubr.f32.mxu1 %v1269_v31 }
 0x3b3   : > { %1440 = vmatprep.subr.mxu1 %v1218_v51 }
 0x3b5   : > { %1352 = vmatmul.mubr.f32.vlgmr.msra.gmra.mxu1 %v1268_v58 }
 0x3b6   : > { %1441 = vmatpush1.msra.mxu1 %v1217_v34  ;;  %1356 = vmatprep.mubr.f32.mxu1 %v1272_v57 }
 0x3b7   : > { %1442 = vmatprep.subr.mxu1 %v1216_v48 }
 0x3b8   : > { %1443 = vmatpush1.msra.mxu1 %v1215_v46 }
 0x3b9   : > { %1444 = vmatprep.subr.mxu1 %v1214_v54  ;;  %1357 = vmatmul.mubr.f32.gmra.mxu1 %v1271_v3 }
 0x3ba   : > { %1445 = vmatpush1.msra.mxu1 %v1213_v22  ;;  %1361 = vmatprep.mubr.f32.mxu1 %v1275_v13 }
 0x3bb   : > { %1446 = vmatprep.subr.mxu1 %v1212_v35 }
 0x3bc   : > { %1447 = vmatpush1.msra.mxu1 %v1211_v21 }
 0x3bd   : > { %1362 = vmatmul.mubr.f32.gmra.mxu1 %v1274_v62  ;;  %v1950_v62 = vmax.f32 %v3462_v5, %v3476_v18 }
 0x3be   : > { %1366 = vmatprep.mubr.f32.mxu1 %v1278_v8  ;;  %v1621_v8 = vpop.xlane.xlu1 %1620 }
 0x3c1   : > { %1367 = vmatmul.mubr.f32.gmra.mxu1 %v1277_v41 }
 0x3c2   : > { %1480 = vmatprep.mubr.f32.mxu1 %v4057_v55  ;;  %v1624_v41 = vpop.xlane.xlu1 %1623 }
 0x3da   : > { %v730_v2 = vpop.f32.mrf.mxu0 }
 0x3dc   : > { %v732_v33 = vpop.f32.mrf.mxu0 }
 0x3de   : > { %v736_v51 = vpop.f32.mrf.mxu0 }
 0x3e0   : > { %v738_v58 = vpop.f32.mrf.mxu0 }
 0x3e2   : > { %v742_v43 = vpop.f32.mrf.mxu0 }
 0x3ea   : > { %v1949_v27 = vpop.xlane.xlu0 %1948 }
 0x3eb   : > { %v1959_v39 = vsub.f32 %v4058_v60, %v1949_v27  ;;  %v1960_v11 = vsub.f32 %v3460_v24, %v1949_v27  ;;  %v744_v60 = vpop.f32.mrf.mxu0  ;;  %v1627_v27 = vpop.xlane.xlu1 %1626 }
 0x3ed   : > { %v1967_v7 = vmul.f32 1.442695, %v1959_v39  ;;  %v1969_v31 = vmul.f32 1.442695, %v1960_v11  ;;  %v748_v34 = vpop.f32.mrf.mxu0 }
 0x3ee   : > { %v1649_v11 = vmul.f32 0.00390625, %v748_v34  ;;  %v1645_v34 = vmul.f32 0.00390625, %v736_v51  ;;  %v4068_v51 = vld [vmem:[#allocation14_spill] sm:$0xff] }
 0x3ef   : > { %2810 = vpow2.f32 %v1967_v7  ;;  %v750_v24 = vpop.f32.mrf.mxu0  ;;  %v1630_v39 = vpop.xlane.xlu1 %1629 }
 0x3f0   : > { %2812 = vpow2.f32 %v1969_v31  ;;  %v1650_v57 = vmul.f32 0.00390625, %v750_v24  ;;  %v1648_v31 = vmul.f32 0.00390625, %v744_v60 }
 0x3f1   : > { %2814 = vrcp.f32 %v1621_v8 }
 0x3f2   : > { %1675 = vmatprep.subr.mxu1 %v1650_v57  ;;  %2816 = vrcp.f32 %v1624_v41  ;;  %v1646_v57 = vmul.f32 0.00390625, %v738_v58 }
 0x3f3   : > { %2818 = vrcp.f32 %v1627_v27  ;;  %v4071_v27 = vld [vmem:[#allocation20_spill] sm:$0xff] }
 0x3f4   : > { %2820 = vrcp.f32 %v1630_v39  ;;  %v1578_v39 = vmul.f32 0.17677669, %v4071_v27 }
 0x3fc   : > { %v3772_v61 = vpop.eup %2810 }
 0x3fd   : > { %v3774_v12 = vpop.eup %2812 }
 0x3fe   : > { %v1983_v32 = vadd.f32 %v3774_v12, %v3772_v61  ;;  %v2815_v60 = vpop.eup %2814 }
 0x3ff   : > { %v1633_v58 = vmul.f32 %v2815_v60, %v3684_v50  ;;  %v4070_v50 = vld [vmem:[#allocation15_spill] sm:$0xff] }
 0x400   : > { %1984 = vadd.xlane.f32.xlu0 %v1983_v32  ;;  %v1647_v32 = vmul.f32 0.00390625, %v742_v43  ;;  %v1643_v43 = vmul.f32 0.00390625, %v730_v2  ;;  %v4069_v2 = vld [vmem:[#allocation19_spill] sm:$0xff]  ;;  %v1579_v41 = vmul.f32 0.17677669, %v4070_v50 }
 0x401   : > { %v1580_v8 = vmul.f32 0.17677669, %v4069_v2 }
 0x465   : > { %v3778_v47 = vpop.f32.mrf.mxu1 }
 0x467   : > { %v3780_v42 = vpop.f32.mrf.mxu1 }
 0x469   : > { %v3782_v48 = vpop.f32.mrf.mxu1 }
 0x46b   : > { %v3784_v49 = vpop.f32.mrf.mxu1 }
 0x46d   : > { %v3786_v46 = vpop.f32.mrf.mxu1 }
 0x46f   : > { %v3788_v1 = vpop.f32.mrf.mxu1 }
 0x471   : > { %v3790_v54 = vpop.f32.mrf.mxu1 }
 0x473   : > { %v3792_v3 = vpop.f32.mrf.mxu1 }
 0x475   : > { %v1353_v25 = vpop.f32.mrf.mxu1 }
 0x476   : > { %1372 = vxpose.xlu1.b32.start [1/4] (short) (narrow) %v1353_v25, 32 }
 0x477   : > { %v1355_v22 = vpop.f32.mrf.mxu1 }
 0x478   : > { %v1644_v22 = vmul.f32 0.00390625, %v732_v33  ;;  %v1632_v33 = vmul.f32 %v2815_v60, %v3682_v38 }
 0x479   : > { %v1358_v13 = vpop.f32.mrf.mxu1 }
 0x47a   : > { %1373 = vxpose.xlu1.b32.cont [2/4] (short) (narrow) %v1358_v13, 32 }
 0x47b   : > { %v1360_v53 = vpop.f32.mrf.mxu1 }
 0x47c   : > { %v2817_v53 = vpop.eup %2816 }
 0x47d   : > { %v1363_v4 = vpop.f32.mrf.mxu1 }
 0x47e   : > { %1374 = vxpose.xlu1.b32.cont [3/4] (short) (narrow) %v1363_v4, 32  ;;  %v4067_v4 = vld [vmem:[#allocation18_spill] sm:$0xff] }
 0x47f   : > { %v1365_v35 = vpop.f32.mrf.mxu1 }
 0x480   : > { %v1582_v35 = vmul.f32 0.17677669, %v4067_v4 }
 0x481   : > { %v1368_v30 = vpop.f32.mrf.mxu1 }
 0x482   : > { %1375 = vxpose.xlu1.b32.end [4/4] (short) (narrow) %v1368_v30, 32  ;;  %v1581_v30 = vmul.f32 0.17677669, %v4068_v51 }
 0x483   : > { %v1370_v21 = vpop.f32.mrf.mxu1 }
 0x484   : > { %v1636_v21 = vmul.f32 %v2817_v53, %v3692_v44  ;;  %v4073_v44 = vld [vmem:[#allocation21_spill] sm:$0xff] }
 0x4a9   : > { %1951 = vmax.xlane.f32.xlu1 %v1950_v62  ;;  %v2819_v62 = vpop.eup %2818 }
 0x4aa   : > { %v1638_v60 = vmul.f32 %v2819_v62, %v3698_v15 }
 0x4f2   : > { %v1388_v7 = vpop.trf.xlu1 }
 0x4f3   : > { %2594 = vmatmul.mubr.msk.f32.vlgmr.msra.gmra.mxu1 %vm279_vm0, %v1388_v7  ;;  %v4072_v7 = vld [vmem:[#allocation16_spill] sm:$0xff] }
 0x4f4   : > { %1676 = vmatpush1.xpose.msra.mxu1 %v1649_v11  ;;  %1486 = vmatprep.mubr.f32.mxu1 %v4057_v55  ;;  %v1635_v11 = vmul.f32 %v2817_v53, %v3690_v40  ;;  %v1577_v38 = vmul.f32 0.17677669, %v4072_v7 }
 0x4f5   : > { %1677 = vmatprep.subr.mxu1 %v1648_v31  ;;  %v1639_v31 = vmul.f32 %v2819_v62, %v3700_v52 }
 0x4f6   : > { %v1389_v24 = vpop.trf.xlu1 }
 0x4f7   : > { %2595 = vmatmul.mubr.msk.f32.gmra.mxu1 %vm279_vm0, %v1389_v24  ;;  %v1576_v24 = vmul.f32 0.17677669, %v4073_v44 }
 0x4f8   : > { %1678 = vmatpush1.xpose.msra.mxu1 %v1647_v32  ;;  %1492 = vmatprep.mubr.f32.mxu1 %v4057_v55  ;;  %v2821_v32 = vpop.eup %2820 }
 0x4f9   : > { %1679 = vmatprep.subr.mxu1 %v1646_v57  ;;  %v4074_v57 = vld [vmem:[#allocation17_spill] sm:$0xff]  ;;  %v1642_v40 = vmul.f32 %v2821_v32, %v3708_v28  ;;  %v1641_v52 = vmul.f32 %v2821_v32, %v3706_v20 }
 0x4fa   : > { %v1390_v25 = vpop.trf.xlu1 }
 0x4fb   : > { %2596 = vmatmul.mubr.msk.f32.gmra.mxu1 %vm279_vm0, %v1390_v25  ;;  %v2014_v25 = vmul.f32 0.00390625, %v3704_v59 }
 0x4fc   : > { %1680 = vmatpush1.xpose.msra.mxu1 %v1645_v34  ;;  %1498 = vmatprep.mubr.f32.mxu1 %v4057_v55  ;;  %v1575_v34 = vmul.f32 0.17677669, %v4074_v57 }
 0x4fd   : > { %1681 = vmatprep.subr.mxu1 %v1644_v22  ;;  %v1955_v22 = vpop.xlane.xlu0 %1954 }
 0x4fe   : > { %v1391_v13 = vpop.trf.xlu1 }
 0x4ff   : > { %2597 = vmatmul.mubr.msk.f32.gmra.mxu1 %vm279_vm0, %v1391_v13  ;;  %v1964_v13 = vsub.f32 %v3492_v0, %v1955_v22 }
 0x500   : > { %1682 = vmatpush1.xpose.msra.mxu1 %v1643_v43  ;;  %1715 = vmatprep.mubr.f32.mxu1 %v1633_v58  ;;  %v1963_v43 = vsub.f32 %v3478_v36, %v1955_v22 }
 0x501   : > { %1804 = vmatprep.subr.mxu1 %v1582_v35  ;;  %v1958_v59 = vpop.xlane.xlu0 %1957  ;;  %v1977_v20 = vmul.f32 1.442695, %v1964_v13 }
 0x502   : > { %v1975_v28 = vmul.f32 1.442695, %v1963_v43  ;;  %v1965_v4 = vsub.f32 %v3494_v23, %v1958_v59  ;;  %v1966_v51 = vsub.f32 %v3496_v17, %v1958_v59  ;;  %v2013_v59 = vmul.f32 0.00390625, %v3696_v16 }
 0x503   : > { %1716 = vmatmul.mubr.f32.vlgmr.msra.gmra.mxu1 %v1632_v33 }
 0x504   : > { %1805 = vmatpush1.msra.mxu1 %v1581_v30  ;;  %1720 = vmatprep.mubr.f32.mxu1 %v1636_v21  ;;  %v1979_v36 = vmul.f32 1.442695, %v1965_v4  ;;  %v1981_v0 = vmul.f32 1.442695, %v1966_v51  ;;  %v2010_v4 = vmul.f32 0.00390625, %v3678_v37  ;;  %v2007_v37 = vmul.f32 0.00390625, %v3666_v45 }
 0x505   : > { %1806 = vmatprep.subr.mxu1 %v1580_v8  ;;  %v1944_v45 = vmul.f32 0.17677669, %v3509_v63  ;;  %v4077_v63 = vld [vmem:[#allocation24_spill] sm:$0xff] }
 0x506   : > { %1807 = vmatpush1.msra.mxu1 %v1579_v41 }
 0x507   : > { %1808 = vmatprep.subr.mxu1 %v1578_v39  ;;  %1721 = vmatmul.mubr.f32.gmra.mxu1 %v1635_v11 }
 0x508   : > { %1809 = vmatpush1.msra.mxu1 %v1577_v38  ;;  %1725 = vmatprep.mubr.f32.mxu1 %v1639_v31 }
 0x509   : > { %1810 = vmatprep.subr.mxu1 %v1576_v24 }
 0x50a   : > { %1811 = vmatpush1.msra.mxu1 %v1575_v34 }
 0x50b   : > { %2039 = vmatprep.subr.mxu1 %v2014_v25  ;;  %1726 = vmatmul.mubr.f32.gmra.mxu1 %v1638_v60 }
 0x50c   : > { %1730 = vmatprep.mubr.f32.mxu1 %v1642_v40 }
 0x50f   : > { %1731 = vmatmul.mubr.f32.gmra.mxu1 %v1641_v52  ;;  %v1985_v52 = vpop.xlane.xlu0 %1984 }
 0x510   : > { %1844 = vmatprep.mubr.f32.mxu1 %v4057_v55 }
 0x532   : > { %v1952_v58 = vpop.xlane.xlu1 %1951 }
 0x533   : > { %v1961_v15 = vsub.f32 %v3462_v5, %v1952_v58  ;;  %v1962_v53 = vsub.f32 %v3476_v18, %v1952_v58 }
 0x535   : > { %v1971_v35 = vmul.f32 1.442695, %v1961_v15  ;;  %v1973_v33 = vmul.f32 1.442695, %v1962_v53  ;;  %v2012_v15 = vmul.f32 0.00390625, %v3688_v10  ;;  %v2011_v53 = vmul.f32 0.00390625, %v3680_v26 }
 0x536   : > { %v2009_v10 = vmul.f32 0.00390625, %v3674_v14  ;;  %v1946_v14 = vmul.f32 0.17677669, %v3507_v6  ;;  %v1942_v6 = vmul.f32 0.17677669, %v3511_v19 }
 0x537   : > { %2822 = vpow2.f32 %v1971_v35 }
 0x538   : > { %2824 = vpow2.f32 %v1973_v33  ;;  %v2008_v33 = vmul.f32 0.00390625, %v3670_v56 }
 0x539   : > { %2826 = vpow2.f32 %v1975_v28 }
 0x53a   : > { %2828 = vpow2.f32 %v1977_v20 }
 0x53b   : > { %2830 = vpow2.f32 %v1979_v36  ;;  %v4075_v36 = vld [vmem:[#allocation22_spill] sm:$0xff] }
 0x53c   : > { %2832 = vpow2.f32 %v1981_v0  ;;  %v1945_v0 = vmul.f32 0.17677669, %v4075_v36 }
 0x53d   : > { %2834 = vrcp.f32 %v1985_v52 }
 0x544   : > { %v3827_v30 = vpop.eup %2822 }
 0x545   : > { %v3829_v5 = vpop.eup %2824 }
 0x546   : > { %v3831_v18 = vpop.eup %2826  ;;  %v1986_v23 = vadd.f32 %v3829_v5, %v3827_v30 }
 0x547   : > { %v3835_v21 = vpop.eup %2828 }
 0x548   : > { %1987 = vadd.xlane.f32.xlu0 %v1986_v23  ;;  %v3837_v17 = vpop.eup %2830  ;;  %v1989_v62 = vadd.f32 %v3835_v21, %v3831_v18 }
 0x549   : > { %v3841_v2 = vpop.eup %2832 }
 0x54a   : > { %v1992_v8 = vadd.f32 %v3841_v2, %v3837_v17  ;;  %v2835_v35 = vpop.eup %2834 }
 0x54b   : > { %v1997_v20 = vmul.f32 %v2835_v35, %v3774_v12  ;;  %v1996_v56 = vmul.f32 %v2835_v35, %v3772_v61  ;;  %v4076_v12 = vld [vmem:[#allocation23_spill] sm:$0xff]  ;;  %v1941_v61 = vmul.f32 0.17677669, %v3502_v9  ;;  %v2238_v35 = vld [vmem:[%s4029_s3 + $0x8] sm:$0xff] }
 0x54c   : > { %1990 = vadd.xlane.f32.xlu0 %v1989_v62 }
 0x550   : > { %1993 = vadd.xlane.f32.xlu0 %v1992_v8  ;;  %v1943_v8 = vmul.f32 0.17677669, %v4076_v12 }
 0x5b3   : > { %v3845_v50 = vpop.f32.mrf.mxu1 }
 0x5b5   : > { %v3847_v41 = vpop.f32.mrf.mxu1 }
 0x5b7   : > { %v3849_v27 = vpop.f32.mrf.mxu1 }
 0x5b9   : > { %v3851_v39 = vpop.f32.mrf.mxu1 }
 0x5bb   : > { %v3853_v11 = vpop.f32.mrf.mxu1 }
 0x5bd   : > { %v3855_v7 = vpop.f32.mrf.mxu1 }
 0x5bf   : > { %v3857_v38 = vpop.f32.mrf.mxu1 }
 0x5c1   : > { %v3859_v31 = vpop.f32.mrf.mxu1 }
 0x5c3   : > { %v1717_v32 = vpop.f32.mrf.mxu1 }
 0x5c4   : > { %1736 = vxpose.xlu0.b32.start [1/4] (short) (narrow) %v1717_v32, 32 }
 0x5c5   : > { %v1719_v44 = vpop.f32.mrf.mxu1 }
 0x5c7   : > { %v1722_v24 = vpop.f32.mrf.mxu1 }
 0x5c8   : > { %1737 = vxpose.xlu0.b32.cont [2/4] (short) (narrow) %v1722_v24, 32 }
 0x5c9   : > { %v1724_v57 = vpop.f32.mrf.mxu1 }
 0x5ca   : > { %v1939_v57 = vmul.f32 0.17677669, %v4077_v63 }
 0x5cb   : > { %v1727_v34 = vpop.f32.mrf.mxu1 }
 0x5cc   : > { %1738 = vxpose.xlu0.b32.cont [3/4] (short) (narrow) %v1727_v34, 32 }
 0x5cd   : > { %v1729_v25 = vpop.f32.mrf.mxu1 }
 0x5cf   : > { %v1732_v60 = vpop.f32.mrf.mxu1 }
 0x5d0   : > { %1739 = vxpose.xlu0.b32.end [4/4] (short) (narrow) %v1732_v60, 32 }
 0x5d1   : > { %v1734_v40 = vpop.f32.mrf.mxu1  ;;  %v1988_v22 = vpop.xlane.xlu0 %1987 }
 0x5d2   : > { %2836 = vrcp.f32 %v1988_v22 }
 0x5d5   : > { %v1991_v43 = vpop.xlane.xlu0 %1990 }
 0x5d6   : > { %2838 = vrcp.f32 %v1991_v43 }
 0x5d9   : > { %v1994_v13 = vpop.xlane.xlu0 %1993 }
 0x5da   : > { %2840 = vrcp.f32 %v1994_v13 }
 0x5df   : > { %v2837_v51 = vpop.eup %2836 }
 0x5e0   : > { %v2000_v23 = vmul.f32 %v2837_v51, %v3829_v5  ;;  %v1999_v32 = vmul.f32 %v2837_v51, %v3827_v30  ;;  %v1940_v5 = vmul.f32 0.17677669, %v3513_v29  ;;  %v2420_v51 = vld [vmem:[%s4030_s4 + $0x8] sm:$0xff] }
 0x5e3   : > { %v2839_v62 = vpop.eup %2838 }
 0x5e4   : > { %v2003_v44 = vmul.f32 %v2839_v62, %v3835_v21  ;;  %v2002_v34 = vmul.f32 %v2839_v62, %v3831_v18 }
 0x5e7   : > { %v2841_v24 = vpop.eup %2840 }
 0x5e8   : > { %v2006_v19 = vmul.f32 %v2841_v24, %v3841_v2  ;;  %v2005_v9 = vmul.f32 %v2841_v24, %v3837_v17 }
 0x640   : > { %v1752_v58 = vpop.trf.xlu0 }
 0x641   : > { %2598 = vmatmul.mubr.msk.f32.vlgmr.msra.gmra.mxu1 %vm279_vm0, %v1752_v58 }
 0x642   : > { %2040 = vmatpush1.xpose.msra.mxu1 %v2013_v59  ;;  %1850 = vmatprep.mubr.f32.mxu1 %v4057_v55 }
 0x643   : > { %2041 = vmatprep.subr.mxu1 %v2012_v15 }
 0x644   : > { %v1753_v28 = vpop.trf.xlu0 }
 0x645   : > { %2599 = vmatmul.mubr.msk.f32.gmra.mxu1 %vm279_vm0, %v1753_v28 }
 0x646   : > { %2042 = vmatpush1.xpose.msra.mxu1 %v2011_v53  ;;  %1856 = vmatprep.mubr.f32.mxu1 %v4057_v55 }
 0x647   : > { %2043 = vmatprep.subr.mxu1 %v2010_v4 }
 0x648   : > { %v1754_v16 = vpop.trf.xlu0 }
 0x649   : > { %2600 = vmatmul.mubr.msk.f32.gmra.mxu1 %vm279_vm0, %v1754_v16  ;;  %v2237_v16 = vld [vmem:[%s4029_s3] sm:$0xff] }
 0x64a   : > { %2044 = vmatpush1.xpose.msra.mxu1 %v2009_v10  ;;  %1862 = vmatprep.mubr.f32.mxu1 %v4057_v55 }
 0x64b   : > { %2045 = vmatprep.subr.mxu1 %v2008_v33  ;;  %v2909_v33 = vmov 0  }
 0x64c   : > { %v1755_v26 = vpop.trf.xlu0  ;;  %2664 = vset.pattern.permute.xlu0 %v2909_v33 }
 0x64d   : > { %2601 = vmatmul.mubr.msk.f32.gmra.mxu1 %vm279_vm0, %v1755_v26  ;;  %2243 = vperm.xlu0 %2664, %v2237_v16   ;;  %v2240_v26 = vld [vmem:[%s4029_s3 + $0x18] sm:$0xff] }
 0x64e   : > { %2046 = vmatpush1.xpose.msra.mxu1 %v2007_v37  ;;  %2079 = vmatprep.mubr.f32.mxu1 %v1997_v20  ;;  %v2239_v37 = vld [vmem:[%s4029_s3 + $0x10] sm:$0xff]  ;;  %v2419_v20 = vld [vmem:[%s4030_s4] sm:$0xff] }
 0x64f   : > { %2168 = vmatprep.subr.mxu1 %v1946_v14  ;;  %v2421_v14 = vld [vmem:[%s4030_s4 + $0x10] sm:$0xff] }
 0x651   : > { %2080 = vmatmul.mubr.f32.vlgmr.msra.gmra.mxu1 %v1996_v56  ;;  %2253 = vperm.xlu0 %2664, %v2239_v37   ;;  %v2422_v56 = vld [vmem:[%s4030_s4 + $0x18] sm:$0xff] }
 0x652   : > { %2169 = vmatpush1.msra.mxu1 %v1945_v0  ;;  %2084 = vmatprep.mubr.f32.mxu1 %v2000_v23 }
 0x653   : > { %2170 = vmatprep.subr.mxu1 %v1944_v45 }
 0x654   : > { %2171 = vmatpush1.msra.mxu1 %v1943_v8 }
 0x655   : > { %2172 = vmatprep.subr.mxu1 %v1942_v6  ;;  %2085 = vmatmul.mubr.f32.gmra.mxu1 %v1999_v32 }
 0x656   : > { %2173 = vmatpush1.msra.mxu1 %v1941_v61  ;;  %2089 = vmatprep.mubr.f32.mxu1 %v2003_v44 }
 0x657   : > { %2174 = vmatprep.subr.mxu1 %v1940_v5  ;;  %2425 = vperm.xlu0 %2664, %v2419_v20  }
 0x658   : > { %2175 = vmatpush1.msra.mxu1 %v1939_v57 }
 0x659   : > { %2090 = vmatmul.mubr.f32.gmra.mxu1 %v2002_v34 }
 0x65a   : > { %2094 = vmatprep.mubr.f32.mxu1 %v2006_v19 }
 0x65b   : > { %2435 = vperm.xlu0 %2664, %v2421_v14  }
 0x65d   : > { %2095 = vmatmul.mubr.f32.gmra.mxu1 %v2005_v9 }
 0x65e   : > { %2208 = vmatprep.mubr.f32.mxu1 %v4057_v55 }
 0x701   : > { %v3892_v30 = vpop.f32.mrf.mxu1 }
 0x703   : > { %v3894_v29 = vpop.f32.mrf.mxu1 }
 0x705   : > { %v3896_v21 = vpop.f32.mrf.mxu1 }
 0x707   : > { %v3898_v25 = vpop.f32.mrf.mxu1 }
 0x709   : > { %v3900_v60 = vpop.f32.mrf.mxu1 }
 0x70b   : > { %v3902_v18 = vpop.f32.mrf.mxu1 }
 0x70d   : > { %v1864_v2 = vpop.f32.mrf.mxu1 }
 0x70f   : > { %v1866_v40 = vpop.f32.mrf.mxu1 }
 0x711   : > { %v2081_v52 = vpop.f32.mrf.mxu1 }
 0x712   : > { %2100 = vxpose.xlu1.b32.start [1/4] (short) (narrow) %v2081_v52, 32 }
 0x713   : > { %v2083_v17 = vpop.f32.mrf.mxu1 }
 0x715   : > { %v2086_v22 = vpop.f32.mrf.mxu1 }
 0x716   : > { %2101 = vxpose.xlu1.b32.cont [2/4] (short) (narrow) %v2086_v22, 32 }
 0x717   : > { %v2088_v43 = vpop.f32.mrf.mxu1 }
 0x719   : > { %v2091_v13 = vpop.f32.mrf.mxu1 }
 0x71a   : > { %2102 = vxpose.xlu1.b32.cont [3/4] (short) (narrow) %v2091_v13, 32 }
 0x71b   : > { %v2093_v59 = vpop.f32.mrf.mxu1 }
 0x71d   : > { %v2096_v58 = vpop.f32.mrf.mxu1 }
 0x71e   : > { %2103 = vxpose.xlu1.b32.end [4/4] (short) (narrow) %v2096_v58, 32 }
 0x71f   : > { %v2098_v15 = vpop.f32.mrf.mxu1 }
 0x73c   : > { %2665 = vset.pattern.permute.xlu1 %v2909_v33 }
 0x73d   : > { %2248 = vperm.xlu1 %2665, %v2238_v35  }
 0x741   : > { %2258 = vperm.xlu1 %2665, %v2240_v26  }
 0x745   : > { %2430 = vperm.xlu1 %2665, %v2420_v51  }
 0x749   : > { %2440 = vperm.xlu1 %2665, %v2422_v56  }
 0x78e   : > { %v2116_v53 = vpop.trf.xlu1 }
 0x78f   : > { %2602 = vmatmul.mubr.msk.f32.vlgmr.msra.gmra.mxu1 %vm279_vm0, %v2116_v53 }
 0x790   : > { %2214 = vmatprep.mubr.f32.mxu1 %v4057_v55 }
 0x792   : > { %v2117_v28 = vpop.trf.xlu1 }
 0x793   : > { %2603 = vmatmul.mubr.msk.f32.gmra.mxu1 %vm279_vm0, %v2117_v28 }
 0x794   : > { %2220 = vmatprep.mubr.f32.mxu1 %v4057_v55 }
 0x796   : > { %v2118_v4 = vpop.trf.xlu1 }
 0x797   : > { %2604 = vmatmul.mubr.msk.f32.gmra.mxu1 %vm279_vm0, %v2118_v4 }
 0x798   : > { %2226 = vmatprep.mubr.f32.mxu1 %v4057_v55 }
 0x79a   : > { %v2119_v10 = vpop.trf.xlu1 }
 0x79b   : > { %2605 = vmatmul.mubr.msk.f32.gmra.mxu1 %vm279_vm0, %v2119_v10 }
 0x79c   : > { %2325 = vmatprep.mubr.f32.mxu1 %v4057_v55 }
 0x84f   : > { %v2210_v36 = vpop.f32.mrf.mxu1 }
 0x851   : > { %v2212_v0 = vpop.f32.mrf.mxu1 }
 0x853   : > { %v2216_v23 = vpop.f32.mrf.mxu1 }
 0x855   : > { %v2218_v62 = vpop.f32.mrf.mxu1 }
 0x857   : > { %v2222_v45 = vpop.f32.mrf.mxu1 }
 0x859   : > { %v2224_v12 = vpop.f32.mrf.mxu1 }
 0x85b   : > { %v2228_v8 = vpop.f32.mrf.mxu1 }
 0x85d   : > { %v2230_v6 = vpop.f32.mrf.mxu1 }
 0x85e   : > { %2261 = vmatprep.subr.mxu1 %v2230_v6 }
 0x85f   : > { %2262 = vmatpush1.msra.mxu1 %v2228_v8 }
 0x860   : > { %2263 = vmatprep.subr.mxu1 %v2224_v12 }
 0x861   : > { %2264 = vmatpush1.msra.mxu1 %v2222_v45 }
 0x862   : > { %2265 = vmatprep.subr.mxu1 %v2218_v62 }
 0x863   : > { %2266 = vmatpush1.msra.mxu1 %v2216_v23 }
 0x864   : > { %2267 = vmatprep.subr.mxu1 %v2212_v0 }
 0x865   : > { %2268 = vmatpush1.msra.mxu1 %v2210_v36 }
 0x866   : > { %2269 = vmatprep.subr.mxu1 %v1866_v40 }
 0x867   : > { %2270 = vmatpush1.msra.mxu1 %v1864_v2 }
 0x868   : > { %2271 = vmatprep.subr.mxu1 %v3902_v18 }
 0x869   : > { %2272 = vmatpush1.msra.mxu1 %v3900_v60 }
 0x86a   : > { %2273 = vmatprep.subr.mxu1 %v3898_v25 }
 0x86b   : > { %2274 = vmatpush1.msra.mxu1 %v3896_v21 }
 0x86c   : > { %2275 = vmatprep.subr.mxu1 %v3894_v29 }
 0x86d   : > { %2276 = vmatpush1.msra.mxu1 %v3892_v30 }
 0x86e   : > { %2277 = vmatprep.subr.mxu1 %v3859_v31 }
 0x86f   : > { %2278 = vmatpush1.msra.mxu1 %v3857_v38 }
 0x870   : > { %2279 = vmatprep.subr.mxu1 %v3855_v7 }
 0x871   : > { %2280 = vmatpush1.msra.mxu1 %v3853_v11 }
 0x872   : > { %2281 = vmatprep.subr.mxu1 %v3851_v39 }
 0x873   : > { %2282 = vmatpush1.msra.mxu1 %v3849_v27  ;;  %v2233_v27 = vld [vmem:[%s4028_s2] sm:$0xff] }
 0x874   : > { %2283 = vmatprep.subr.mxu1 %v3847_v41 }
 0x875   : > { %2284 = vmatpush1.msra.mxu1 %v3845_v50 }
 0x876   : > { %2285 = vmatprep.subr.mxu1 %v3792_v3  ;;  %v2249_v3 = vpop.permute.xlu1 %2248 }
 0x877   : > { %2286 = vmatpush1.msra.mxu1 %v3790_v54 }
 0x878   : > { %2287 = vmatprep.subr.mxu1 %v3788_v1  ;;  %v2234_v1 = vld [vmem:[%s4028_s2 + $0x8] sm:$0xff] }
 0x879   : > { %2288 = vmatpush1.msra.mxu1 %v3786_v46 }
 0x87a   : > { %2289 = vmatprep.subr.mxu1 %v3784_v49  ;;  %v2244_v49 = vpop.permute.xlu0 %2243  ;;  %v2259_v24 = vpop.permute.xlu1 %2258 }
 0x87b   : > { %2290 = vmatpush1.msra.mxu1 %v3782_v48  ;;  %v2235_v48 = vld [vmem:[%s4028_s2 + $0x10] sm:$0xff] }
 0x87c   : > { %2291 = vmatprep.subr.mxu1 %v3780_v42 }
 0x87d   : > { %2292 = vmatpush1.msra.mxu1 %v3778_v47  ;;  %v2236_v47 = vld [vmem:[%s4028_s2 + $0x18] sm:$0xff] }
 0x87e   : > { %2326 = vmatmul.mubr.f32.vlgmr.msra.gmra.mxu1 %v2233_v27  ;;  %v2254_v39 = vpop.permute.xlu0 %2253 }
 0x87f   : > { %2331 = vmatprep.mubr.f32.mxu1 %v4057_v55 }
 0x882   : > { %2332 = vmatmul.mubr.f32.gmra.mxu1 %v2234_v1 }
 0x883   : > { %2337 = vmatprep.mubr.f32.mxu1 %v4057_v55 }
 0x886   : > { %2338 = vmatmul.mubr.f32.gmra.mxu1 %v2235_v48 }
 0x887   : > { %2343 = vmatprep.mubr.f32.mxu1 %v4057_v55 }
 0x88a   : > { %2344 = vmatmul.mubr.f32.gmra.mxu1 %v2236_v47 }
 0x93e   : > { %v2327_v42 = vpop.f32.mrf.mxu1 }
 0x93f   : > { %v2328_v7 = vadd.f32 %v2327_v42, %v2244_v49 }
 0x940   : > { %v2329_v46 = vpop.f32.mrf.mxu1 }
 0x941   : > { %v2330_v61 = vadd.f32 %v2329_v46, %v2244_v49 }
 0x942   : > { %v2333_v54 = vpop.f32.mrf.mxu1 }
 0x943   : > { %v2334_v41 = vadd.f32 %v2333_v54, %v2249_v3 }
 0x944   : > { %v2335_v50 = vpop.f32.mrf.mxu1 }
 0x945   : > { %v2336_v38 = vadd.f32 %v2335_v50, %v2249_v3  ;;  %v2350_v55 = vadd.f32 %v2334_v41, %v2328_v7 }
 0x946   : > { %v2339_v11 = vpop.f32.mrf.mxu1 }
 0x947   : > { %v2340_v31 = vadd.f32 %v2339_v11, %v2254_v39  ;;  %v2359_v63 = vadd.f32 %v2336_v38, %v2330_v61 }
 0x948   : > { %v2341_v32 = vpop.f32.mrf.mxu1 }
 0x949   : > { %v2342_v44 = vadd.f32 %v2341_v32, %v2254_v39  ;;  %v2351_v57 = vadd.f32 %v2350_v55, %v2340_v31  ;;  %v2426_v55 = vpop.permute.xlu0 %2425 }
 0x94a   : > { %v2345_v5 = vpop.f32.mrf.mxu1 }
 0x94b   : > { %v2346_v34 = vadd.f32 %v2345_v5, %v2259_v24  ;;  %v2360_v9 = vadd.f32 %v2359_v63, %v2342_v44 }
 0x94c   : > { %v2347_v19 = vpop.f32.mrf.mxu1 }
 0x94d   : > { %v2352_v30 = vadd.f32 %v2351_v57, %v2346_v34  ;;  %v2348_v29 = vadd.f32 %v2347_v19, %v2259_v24  ;;  %v2436_v19 = vpop.permute.xlu0 %2435 }
 0x94f   : > { %v2353_v21 = vrot.slane %v2352_v30, 4  ;;  %v2361_v25 = vadd.f32 %v2360_v9, %v2348_v29 }
 0x951   : > { %v2354_v60 = vadd.f32 %v2353_v21, %v2352_v30  ;;  %v2362_v18 = vrot.slane %v2361_v25, 4 }
 0x953   : > { %v2355_v2 = vrot.slane %v2354_v60, 2  ;;  %v2363_v40 = vadd.f32 %v2362_v18, %v2361_v25 }
 0x955   : > { %v2356_v52 = vadd.f32 %v2355_v2, %v2354_v60  ;;  %v2364_v17 = vrot.slane %v2363_v40, 2 }
 0x957   : > { %v2357_v22 = vrot.slane %v2356_v52, 1  ;;  %v2365_v43 = vadd.f32 %v2364_v17, %v2363_v40 }
 0x959   : > { %v2358_v13 = vadd.f32 %v2357_v22, %v2356_v52  ;;  %v2366_v59 = vrot.slane %v2365_v43, 1 }
 0x95b   : > { %v2369_v58 = vmul.f32 0.03125, %v2358_v13  ;;  %v2367_v15 = vadd.f32 %v2366_v59, %v2365_v43 }
 0x95d   : > { %v2371_v53 = vsub.f32 %v2328_v7, %v2369_v58  ;;  %v2373_v28 = vsub.f32 %v2334_v41, %v2369_v58  ;;  %v2375_v4 = vsub.f32 %v2340_v31, %v2369_v58  ;;  %v2370_v10 = vmul.f32 0.03125, %v2367_v15 }
 0x95e   : > { %v2377_v16 = vsub.f32 %v2346_v34, %v2369_v58 }
 0x95f   : > { %v2379_v35 = vmul.f32 %v2371_v53, %v2371_v53  ;;  %v2381_v33 = vmul.f32 %v2373_v28, %v2373_v28  ;;  %v2372_v37 = vsub.f32 %v2330_v61, %v2370_v10  ;;  %v2374_v26 = vsub.f32 %v2336_v38, %v2370_v10 }
 0x960   : > { %v2376_v20 = vsub.f32 %v2342_v44, %v2370_v10  ;;  %v2383_v51 = vmul.f32 %v2375_v4, %v2375_v4  ;;  %v2378_v56 = vsub.f32 %v2348_v29, %v2370_v10  ;;  %v2385_v23 = vmul.f32 %v2377_v16, %v2377_v16  ;;  %v2431_v44 = vpop.permute.xlu1 %2430 }
 0x961   : > { %v2387_v14 = vadd.f32 %v2381_v33, %v2379_v35  ;;  %v2380_v36 = vmul.f32 %v2372_v37, %v2372_v37  ;;  %v2382_v0 = vmul.f32 %v2374_v26, %v2374_v26 }
 0x962   : > { %v2384_v45 = vmul.f32 %v2376_v20, %v2376_v20  ;;  %v2386_v6 = vmul.f32 %v2378_v56, %v2378_v56 }
 0x963   : > { %v2388_v62 = vadd.f32 %v2387_v14, %v2383_v51  ;;  %v2396_v12 = vadd.f32 %v2382_v0, %v2380_v36 }
 0x964   : > { %v2441_v9 = vpop.permute.xlu1 %2440 }
 0x965   : > { %v2389_v8 = vadd.f32 %v2388_v62, %v2385_v23  ;;  %v2397_v27 = vadd.f32 %v2396_v12, %v2384_v45 }
 0x967   : > { %v2390_v1 = vrot.slane %v2389_v8, 4  ;;  %v2398_v48 = vadd.f32 %v2397_v27, %v2386_v6 }
 0x969   : > { %v2391_v47 = vadd.f32 %v2390_v1, %v2389_v8  ;;  %v2399_v42 = vrot.slane %v2398_v48, 4 }
 0x96b   : > { %v2392_v49 = vrot.slane %v2391_v47, 2  ;;  %v2400_v46 = vadd.f32 %v2399_v42, %v2398_v48 }
 0x96d   : > { %v2393_v54 = vadd.f32 %v2392_v49, %v2391_v47  ;;  %v2401_v3 = vrot.slane %v2400_v46, 2 }
 0x96f   : > { %v2394_v50 = vrot.slane %v2393_v54, 1  ;;  %v2402_v41 = vadd.f32 %v2401_v3, %v2400_v46 }
 0x971   : > { %v2395_v39 = vadd.f32 %v2394_v50, %v2393_v54  ;;  %v2403_v11 = vrot.slane %v2402_v41, 1 }
 0x973   : > { %v2405_v7 = vmul.f32 0.03125, %v2395_v39  ;;  %v2404_v38 = vadd.f32 %v2403_v11, %v2402_v41 }
 0x975   : > { %v2407_v31 = vadd.f32 1e-05, %v2405_v7  ;;  %v2406_v32 = vmul.f32 0.03125, %v2404_v38 }
 0x977   : > { %2842 = vrsqrt.f32 %v2407_v31  ;;  %v2408_v61 = vadd.f32 1e-05, %v2406_v32 }
 0x979   : > { %2844 = vrsqrt.f32 %v2408_v61 }
 0x984   : > { %v2843_v24 = vpop.eup %2842 }
 0x985   : > { %v2411_v5 = vmul.f32 %v2843_v24, %v2371_v53  ;;  %v2413_v63 = vmul.f32 %v2843_v24, %v2373_v28  ;;  %v2415_v57 = vmul.f32 %v2843_v24, %v2375_v4  ;;  %v2417_v34 = vmul.f32 %v2843_v24, %v2377_v16 }
 0x986   : > { %v2845_v30 = vpop.eup %2844 }
 0x987   : > { %v2443_v29 = vmul.f32 %v2426_v55, %v2411_v5  ;;  %v2445_v21 = vmul.f32 %v2431_v44, %v2413_v63  ;;  %v2447_v25 = vmul.f32 %v2436_v19, %v2415_v57  ;;  %v2449_v60 = vmul.f32 %v2441_v9, %v2417_v34 }
 0x988   : > { %v2412_v18 = vmul.f32 %v2845_v30, %v2372_v37  ;;  %v2414_v2 = vmul.f32 %v2845_v30, %v2374_v26  ;;  %v2416_v40 = vmul.f32 %v2845_v30, %v2376_v20  ;;  %v2418_v52 = vmul.f32 %v2845_v30, %v2378_v56 }
 0x989   : > { %2451 = vst [vmem:[%s217_s30] sm:$0xff] %v2443_v29  ;;  %2453 = vst [vmem:[%s217_s30 + $0x10] sm:$0xff] %v2445_v21 }
 0x98a   : > { %2455 = vst [vmem:[%s217_s30 + $0x20] sm:$0xff] %v2447_v25  ;;  %2457 = vst [vmem:[%s217_s30 + $0x30] sm:$0xff] %v2449_v60  ;;  %v2444_v17 = vmul.f32 %v2426_v55, %v2412_v18  ;;  %v2446_v22 = vmul.f32 %v2431_v44, %v2414_v2  ;;  %v2448_v43 = vmul.f32 %v2436_v19, %v2416_v40 }
 0x98b   : > { %v2450_v13 = vmul.f32 %v2441_v9, %v2418_v52 }
 0x98c   : > { %2452 = vst [vmem:[%s217_s30 + $0x8] sm:$0xff] %v2444_v17  ;;  %2454 = vst [vmem:[%s217_s30 + $0x18] sm:$0xff] %v2446_v22 }
 0x98d   : > { %2456 = vst [vmem:[%s217_s30 + $0x28] sm:$0xff] %v2448_v43  ;;  %2458 = vst [vmem:[%s217_s30 + $0x38] sm:$0xff] %v2450_v13 }
 0x98e   : > { %2859 = shalt.err (!%p2856_p3)
}
 0x98f   : > { %s2860_s14 = scalar_lea.hbm %s3980_s22, 1024  ;;  %s2864_s17 = scalar_lea.hbm %s4031_s5, 2048 }
 0x990   : > { %p2861_p4 = scmp.ne.s32.totalorder %s3980_s22, %s2860_s14  ;;  %p2865_p9 = scmp.lt.s32.totalorder %s3980_s22, %s4031_s5 }
 0x991   : > { %p2866_p10 = scmp.lt.s32.totalorder %s2864_s17, %s2860_s14 }
 0x992   : > { %p2862_p7 = pnand %p2861_p4, %p2981_p5 }
 0x993   : > { %p2867_p11 = por %p2866_p10, %p2865_p9 }
 0x994   : > { %p2863_p8 = pneg %p2862_p7 }
 0x996   : > { %p2868_p12 = pnand %p2867_p11, %p2863_p8 }
 0x998   : > { %2871 = shalt.err (!%p2868_p12)
}
 0x999   : > { %s2911_s26 = smov 256   ;;  %s2912_s30 = smov 16  }
 0x99a   : > { %2621 = dma.vmem_to_hbm [thread:$0]  (%p2981_p5), %s3982_s6, 1024, %s3980_s22, %s3986_s9, %s2911_s26, %s2911_s26, %s2912_s30  }
 0x99b PF: > { %p2627_p13 = scmp.ge.s32.totalorder %s2906_s21, 2  ;;  %s2488_s7 = sand.u32 1, %s2894_s18  }
 0x99c   : > { %s2489_s8 = scalar_lea.sflag [#allocation3], %s2488_s7 }
 0x99d   : > { %p2624_p0 = pnand %p2627_p13, %p2985_p6 }
 0x99f   : > { %p2625_p1 = pneg %p2624_p0 }
 0x9a1   : > { %2889 = dma.done.wait (%p2625_p1), %s2489_s8, 1024  }
 0x9a2   : > { %2891 = vsyncadd (%p2625_p1), %s2489_s8, 4294966272  ;;  %p15_p2 = scmp.ge.s32.totalorder %s2968_s24, 4   ;;  %s4078_s18 = smov %s2898_s19 }
 0x9a3   : > { %s4079_s19 = smov %s2902_s20  ;;  %s4080_s20 = smov %s2979_s27 }
 0x9a4   : > { %s4081_s21 = smov %s2968_s24  ;;  %17 = sbr.rel (!%p15_p2) target bundleno = 3 (0x3), region = 75 }
 0x9a9   :  { %2494 = vsyncpa [#allocation3], 1 }
 0x9aa   :  { %2496 = vsyncpa [#allocation3 + $0x1], 1 }

</bundles_post_ra>
